<compile_context>
chip_gen: v7x
topology: tpu7x:2x2x1
jax: 0.10.0
libtpu: 0.0.40
codegen_flags: <defaults>
</compile_context>

<pallas_src>
import functools

import jax
import jax.numpy as jnp
from jax.experimental import pallas as pl
from jax.experimental.pallas import tpu as pltpu

_LN_EPS = 1e-5
_DEFAULT_HIDDEN_TILE = 2048

_TPU_VMEM_CAP = None
_BUFFERED_OK = None


def _round_up(n, m):
    return ((n + m - 1) // m) * m


def _vmem_capacity_bytes():
    global _TPU_VMEM_CAP
    if _TPU_VMEM_CAP is None:
        try:
            _TPU_VMEM_CAP = int(pltpu.get_tpu_info().vmem_capacity_bytes)
        except Exception:
            _TPU_VMEM_CAP = 64 * 1024 * 1024   # safe lower bound (v7x per-TC)
    return _TPU_VMEM_CAP


def _vmem_limit_bytes():
    return int(min(_vmem_capacity_bytes() * 3 // 4, 100 * 1024 * 1024))


def _default_row_tile():
    # 128-MiB VMEM chips (v5e/v6e): bigger row tile amortizes per-step overhead.
    return 512 if _vmem_capacity_bytes() >= 100 * 1024 * 1024 else 256


def _buffered_weights_supported():
    """One-off capability probe for pl.Buffered(1) single-buffered blocks.

    Only the tiny probe kernel sits inside try/except; the real kernels are
    built without any exception masking.
    """
    global _BUFFERED_OK
    if _BUFFERED_OK is None:
        def probe_kernel(a_ref, o_ref):
            o_ref[...] = a_ref[...] * 2.0
        try:
            a = jnp.arange(8 * 128, dtype=jnp.float32).reshape(8, 128)
            out = pl.pallas_call(
                probe_kernel,
                out_shape=jax.ShapeDtypeStruct((8, 128), jnp.float32),
                grid=(1,),
                in_specs=[pl.BlockSpec((8, 128), lambda i: (0, 0),
                                       pipeline_mode=pl.Buffered(1))],
                out_specs=pl.BlockSpec((8, 128), lambda i: (0, 0)),
            )(a)
            jax.block_until_ready(out)
            _BUFFERED_OK = bool(jnp.allclose(out, a * 2.0))
        except Exception:
            _BUFFERED_OK = False
    return _BUFFERED_OK


def _const_spec(shape):
    """BlockSpec for a grid-invariant (weight) operand: never re-DMA'd,
    single-buffered when the build supports pl.Buffered(1)."""
    index_map = lambda *_: (0,) * len(shape)
    if _buffered_weights_supported():
        return pl.BlockSpec(shape, index_map, pipeline_mode=pl.Buffered(1))
    return pl.BlockSpec(shape, index_map)


def _gelu_exact(x):
    # nn.GELU() default = exact erf form.
    return 0.5 * x * (1.0 + jax.lax.erf(x * (2.0 ** -0.5)))


# ---------------------------------------------------------------------------
# Feed-forward block kernel:  x + ls * (GELU(LN(x) @ W1 + b1) @ W2 + b2)
# grid = (row_tiles [parallel], hidden_tiles [arbitrary])
# layer_scale is folded into W2 / b2 on the host.
# ---------------------------------------------------------------------------
def _ffn_block_kernel(x_ref, ln_g_ref, ln_b_ref, w1_ref, b1_ref, w2_ref, b2_ref,
                      o_ref, xn_scr, acc_scr):
    j = pl.program_id(1)

    @pl.when(j == 0)
    def _():
        x = x_ref[...].astype(jnp.float32)                       # (tm, dim)
        mu = jnp.mean(x, axis=-1, keepdims=True)
        var = jnp.mean(jnp.square(x - mu), axis=-1, keepdims=True)
        xn = (x - mu) * jax.lax.rsqrt(var + _LN_EPS)
        xn_scr[...] = (xn * ln_g_ref[...] + ln_b_ref[...]).astype(jnp.bfloat16)
        acc_scr[...] = jnp.zeros_like(acc_scr)

    h = jnp.dot(xn_scr[...], w1_ref[...],
                preferred_element_type=jnp.float32) + b1_ref[...]  # (tm, th) f32
    h = _gelu_exact(h)
    acc_scr[...] += jnp.dot(h.astype(jnp.bfloat16), w2_ref[...],
                            preferred_element_type=jnp.float32)

    @pl.when(j == pl.num_programs(1) - 1)
    def _():
        o_ref[...] = (acc_scr[...] + b2_ref[...]
                      + x_ref[...].astype(jnp.float32)).astype(o_ref.dtype)


def ffn_block(x, p, *, tm=None, hidden_tile=None):
    """x: [B, S, dim].  Returns x + layer_scale * FFN(LayerNorm(x))."""
    B, S, dim = x.shape
    hidden = p["w1"].shape[1]
    N = B * S

    if tm is None:
        tm = _default_row_tile()
    if hidden_tile is None:
        hidden_tile = _DEFAULT_HIDDEN_TILE

    tm_eff = min(tm, _round_up(N, 8))
    n_pad = _round_up(N, tm_eff)

    if hidden <= hidden_tile:
        th = hidden
        hidden_pad = hidden
    else:
        th = _round_up(min(hidden_tile, hidden), 128)
        hidden_pad = _round_up(hidden, th)
    n_h = hidden_pad // th

    x2 = x.reshape(N, dim)
    if n_pad != N:
        x2 = jnp.pad(x2, ((0, n_pad - N), (0, 0)))

    ln_g = p["ln_g"].reshape(1, dim).astype(jnp.float32)
    ln_b = p["ln_b"].reshape(1, dim).astype(jnp.float32)
    w1 = p["w1"].astype(jnp.bfloat16)
    b1 = p["b1"].reshape(1, hidden).astype(jnp.float32)
    w2 = (p["w2"] * p["ls"][None, :]).astype(jnp.bfloat16)       # ls folded in
    b2 = (p["b2"] * p["ls"]).reshape(1, dim).astype(jnp.float32)  # ls folded in
    if hidden_pad != hidden:
        w1 = jnp.pad(w1, ((0, 0), (0, hidden_pad - hidden)))
        b1 = jnp.pad(b1, ((0, 0), (0, hidden_pad - hidden)))
        w2 = jnp.pad(w2, ((0, hidden_pad - hidden), (0, 0)))

    cost = pl.CostEstimate(
        flops=4 * n_pad * dim * hidden_pad,
        transcendentals=n_pad * hidden_pad,
        bytes_accessed=(4 * 2 * n_pad * dim           # x in + out (f32)
                        + 2 * 2 * dim * hidden_pad    # W1 + W2 (bf16), read once
                        + 4 * (hidden_pad + 3 * dim)),
    )

    grid_spec = pltpu.PrefetchScalarGridSpec(
        num_scalar_prefetch=0,
        grid=(n_pad // tm_eff, n_h),
        in_specs=[
            pl.BlockSpec((tm_eff, dim), lambda i, j: (i, 0)),    # x rows
            _const_spec((1, dim)),                               # LN gamma
            _const_spec((1, dim)),                               # LN beta
            pl.BlockSpec((dim, th), lambda i, j: (0, j)),        # W1 hidden tile
            pl.BlockSpec((1, th), lambda i, j: (0, j)),          # b1 hidden tile
            pl.BlockSpec((th, dim), lambda i, j: (j, 0)),        # W2 hidden tile
            _const_spec((1, dim)),                               # b2 (ls folded)
        ],
        out_specs=pl.BlockSpec((tm_eff, dim), lambda i, j: (i, 0)),
        scratch_shapes=[pltpu.VMEM((tm_eff, dim), jnp.bfloat16),  # cached LN(x)
                        pltpu.VMEM((tm_eff, dim), jnp.float32)],  # accumulator
    )
    out2 = pl.pallas_call(
        _ffn_block_kernel,
        out_shape=jax.ShapeDtypeStruct((n_pad, dim), x.dtype),
        grid_spec=grid_spec,
        compiler_params=pltpu.CompilerParams(
            dimension_semantics=("parallel", "arbitrary"),
            vmem_limit_bytes=_vmem_limit_bytes()),
        cost_estimate=cost,
    )(x2, ln_g, ln_b, w1, b1, w2, b2)
    return out2[:N].reshape(B, S, dim)


# ---------------------------------------------------------------------------
# Attention block kernel (CaiT talking-heads attention)
# grid = (batch [parallel], q_tiles [arbitrary])
#
# Talking-heads math refactor (exact):
#   pre-softmax :  dots_mixed[g] = (Q * pre_vec[g]) @ K^T
#                  with pre_vec[g][h*dh+t] = mix_pre[h, g] * scale
#   post-softmax:  Y = sum_g (softmax(dots_mixed[g]) @ V) * post_vec[g]
#                  with post_vec[g][g'*dh+t] = mix_post[g, g']
# so all matmuls have full (inner or S) contraction dims and the head mixing
# is a cheap per-column VPU scaling instead of heads^2 (S,S) FMAs.
# ---------------------------------------------------------------------------
def _attn_block_kernel(xq_ref, xf_ref, ln_g_ref, ln_b_ref, wq_ref, wkv_ref,
                       pre_ref, post_ref, wo_ref, bo_ref, o_ref,
                       k_scr, v_scr, *, heads, inner, s_actual, s_pad):
    # Cache K/V for the whole (padded) sequence once per batch element.
    @pl.when(pl.program_id(1) == 0)
    def _():
        xf = xf_ref[0].astype(jnp.float32)                        # (S_pad, dim)
        mu = jnp.mean(xf, axis=-1, keepdims=True)
        var = jnp.mean(jnp.square(xf - mu), axis=-1, keepdims=True)
        xn = (xf - mu) * jax.lax.rsqrt(var + _LN_EPS)
        xn = (xn * ln_g_ref[...] + ln_b_ref[...]).astype(jnp.bfloat16)
        kv = jnp.dot(xn, wkv_ref[...], preferred_element_type=jnp.float32)
        k_scr[...] = kv[:, :inner].astype(jnp.bfloat16)
        v_scr[...] = kv[:, inner:].astype(jnp.bfloat16)

    xq = xq_ref[0].astype(jnp.float32)                            # (tq, dim)
    mu = jnp.mean(xq, axis=-1, keepdims=True)
    var = jnp.mean(jnp.square(xq - mu), axis=-1, keepdims=True)
    xn_q = (xq - mu) * jax.lax.rsqrt(var + _LN_EPS)
    xn_q = (xn_q * ln_g_ref[...] + ln_b_ref[...]).astype(jnp.bfloat16)
    q = jnp.dot(xn_q, wq_ref[...], preferred_element_type=jnp.float32)  # (tq, inner) f32

    k = k_scr[...]                                                # (S_pad, inner) bf16
    v = v_scr[...]
    cdims = (((1,), (1,)), ((), ()))                              # (M,K)x(N,K)->(M,N)

    masked = s_pad != s_actual
    if masked:
        col_ids = jax.lax.broadcasted_iota(jnp.int32, (1, s_pad), 1)
        key_mask = col_ids < s_actual

    tq = q.shape[0]
    y = jnp.zeros((tq, inner), jnp.float32)
    # TODO(synk): for very long S, switch to flash-style online softmax over kv
    # tiles instead of a full (tq, S_pad) score row block per head.
    for g in range(heads):
        qg = (q * pre_ref[g]).astype(jnp.bfloat16)                # pre-mix + scale folded
        s = jax.lax.dot_general(qg, k, cdims,
                                preferred_element_type=jnp.float32)  # (tq, S_pad)
        if masked:
            s = jnp.where(key_mask, s, -1e30)
        s = s - jnp.max(s, axis=-1, keepdims=True)
        e = jnp.exp(s)
        p = e * pl.reciprocal(jnp.sum(e, axis=-1, keepdims=True), approx=True)
        og = jnp.dot(p.astype(jnp.bfloat16), v,
                     preferred_element_type=jnp.float32)          # (tq, inner)
        y = y + og * post_ref[g]                                  # post-mix folded

    out = jnp.dot(y.astype(jnp.bfloat16), wo_ref[...],
                  preferred_element_type=jnp.float32) + bo_ref[...]
    o_ref[0] = (out + xq).astype(o_ref.dtype)


def attention_block(x, p, *, heads, dim_head, tq=None):
    """x: [B, S, dim].  Returns x + layer_scale * Attention(LayerNorm(x))."""
    # TODO(synk): the `context` concatenation path and dropout > 0 are not
    # implemented (forward defaults context=None, dropout=0.0 are).
    B, S, dim = x.shape
    inner = heads * dim_head
    scale = float(dim_head) ** -0.5

    if tq is None:
        tq = _default_row_tile()
    tq_eff = min(tq, _round_up(S, 8))
    s_pad = _round_up(S, tq_eff)
    n_q = s_pad // tq_eff

    x_p = x if s_pad == S else jnp.pad(x, ((0, 0), (0, s_pad - S), (0, 0)))

    ln_g = p["ln_g"].reshape(1, dim).astype(jnp.float32)
    ln_b = p["ln_b"].reshape(1, dim).astype(jnp.float32)
    wq = p["wq"].astype(jnp.bfloat16)                             # (dim, inner)
    wkv = p["wkv"].astype(jnp.bfloat16)                           # (dim, 2*inner)
    wo = (p["wo"] * p["ls"][None, :]).astype(jnp.bfloat16)        # ls folded in
    bo = (p["bo"] * p["ls"]).reshape(1, dim).astype(jnp.float32)  # ls folded in
    # pre_vec[g, 0, h*dh+t] = mix_pre[h, g] * scale
    pre_vec = (jnp.repeat(p["mix_pre"] * scale, dim_head, axis=0).T
               .reshape(heads, 1, inner).astype(jnp.float32))
    # post_vec[g, 0, g'*dh+t] = mix_post[g, g']
    post_vec = (jnp.repeat(p["mix_post"], dim_head, axis=1)
                .reshape(heads, 1, inner).astype(jnp.float32))

    macs = (B * s_pad * dim * 3 * inner                 # Q + KV projections
            + 2 * B * heads * s_pad * s_pad * inner     # scores + AV (full-K)
            + B * s_pad * inner * dim)                  # output projection
    cost = pl.CostEstimate(
        flops=2 * macs,
        transcendentals=B * heads * s_pad * s_pad,
        bytes_accessed=(4 * 2 * B * s_pad * dim
                        + 2 * (4 * dim * inner)         # bf16 weights, read once
                        + 4 * (2 * heads * inner + 3 * dim)),
    )

    kernel = functools.partial(_attn_block_kernel, heads=heads, inner=inner,
                               s_actual=S, s_pad=s_pad)

    grid_spec = pltpu.PrefetchScalarGridSpec(
        num_scalar_prefetch=0,
        grid=(B, n_q),
        in_specs=[
            pl.BlockSpec((1, tq_eff, dim), lambda b, qi: (b, qi, 0)),  # x query tile
            pl.BlockSpec((1, s_pad, dim), lambda b, qi: (b, 0, 0)),    # x full (K/V)
            _const_spec((1, dim)),                                     # LN gamma
            _const_spec((1, dim)),                                     # LN beta
            _const_spec((dim, inner)),                                 # Wq (bf16)
            _const_spec((dim, 2 * inner)),                             # Wkv (bf16)
            _const_spec((heads, 1, inner)),                            # pre-mix vectors
            _const_spec((heads, 1, inner)),                            # post-mix vectors
            _const_spec((inner, dim)),                                 # Wo (ls folded)
            _const_spec((1, dim)),                                     # bo (ls folded)
        ],
        out_specs=pl.BlockSpec((1, tq_eff, dim), lambda b, qi: (b, qi, 0)),
        scratch_shapes=[pltpu.VMEM((s_pad, inner), jnp.bfloat16),      # K cache
                        pltpu.VMEM((s_pad, inner), jnp.bfloat16)],     # V cache
    )
    # TODO(synk): on v7x with B == 1 the single "parallel" batch axis leaves one
    # TensorCore idle; splitting the q-tile axis across cores would require
    # recomputing (or broadcasting) the K/V scratch per core.
    out = pl.pallas_call(
        kernel,
        out_shape=jax.ShapeDtypeStruct((B, s_pad, dim), x.dtype),
        grid_spec=grid_spec,
        compiler_params=pltpu.CompilerParams(
            dimension_semantics=("parallel", "arbitrary"),
            vmem_limit_bytes=_vmem_limit_bytes()),
        cost_estimate=cost,
    )(x_p, x_p, ln_g, ln_b, wq, wkv, pre_vec, post_vec, wo, bo)
    return out if s_pad == S else out[:, :S, :]


# ---------------------------------------------------------------------------
# Transformer wrapper, parameter init, pure-JAX reference
# ---------------------------------------------------------------------------
def transformer_forward(x, params, *, heads, dim_head, tq=None, tm=None,
                        ffn_hidden_tile=None):
    # TODO(synk): layer_dropout > 0 (stochastic depth) is not implemented; the
    # module default layer_dropout=0.0 keeps every layer, which is what we do.
    for layer in params:
        x = attention_block(x, layer["attn"], heads=heads, dim_head=dim_head, tq=tq)
        x = ffn_block(x, layer["ff"], tm=tm, hidden_tile=ffn_hidden_tile)
    return x


def init_transformer_params(key, *, dim, depth, heads, dim_head, mlp_dim,
                            dtype=jnp.float32):
    inner = heads * dim_head
    lim_in = 1.0 / (dim ** 0.5)
    lim_inner = 1.0 / (inner ** 0.5)
    lim_hid = 1.0 / (mlp_dim ** 0.5)
    params = []
    for layer_idx in range(depth):
        d = layer_idx + 1
        init_eps = 0.1 if d <= 18 else (1e-5 if d <= 24 else 1e-6)
        key, *ks = jax.random.split(key, 15)
        it = iter(ks)
        nxt = lambda: next(it)
        attn = dict(
            ln_g=1.0 + 0.05 * jax.random.normal(nxt(), (dim,), dtype),
            ln_b=0.05 * jax.random.normal(nxt(), (dim,), dtype),
            wq=jax.random.uniform(nxt(), (dim, inner), dtype, -lim_in, lim_in),
            wkv=jax.random.uniform(nxt(), (dim, 2 * inner), dtype, -lim_in, lim_in),
            mix_pre=jax.random.normal(nxt(), (heads, heads), dtype),
            mix_post=jax.random.normal(nxt(), (heads, heads), dtype),
            wo=jax.random.uniform(nxt(), (inner, dim), dtype, -lim_inner, lim_inner),
            bo=jax.random.uniform(nxt(), (dim,), dtype, -lim_inner, lim_inner),
            ls=jnp.full((dim,), init_eps, dtype),
        )
        ff = dict(
            ln_g=1.0 + 0.05 * jax.random.normal(nxt(), (dim,), dtype),
            ln_b=0.05 * jax.random.normal(nxt(), (dim,), dtype),
            w1=jax.random.uniform(nxt(), (dim, mlp_dim), dtype, -lim_in, lim_in),
            b1=jax.random.uniform(nxt(), (mlp_dim,), dtype, -lim_in, lim_in),
            w2=jax.random.uniform(nxt(), (mlp_dim, dim), dtype, -lim_hid, lim_hid),
            b2=jax.random.uniform(nxt(), (dim,), dtype, -lim_hid, lim_hid),
            ls=jnp.full((dim,), init_eps, dtype),
        )
        params.append(dict(attn=attn, ff=ff))
    return params


def _layer_norm_ref(x, g, b):
    mu = jnp.mean(x, axis=-1, keepdims=True)
    var = jnp.mean(jnp.square(x - mu), axis=-1, keepdims=True)
    return (x - mu) * jax.lax.rsqrt(var + _LN_EPS) * g + b


def transformer_reference(x, params, *, heads, dim_head):
    B, S, dim = x.shape
    inner = heads * dim_head
    scale = float(dim_head) ** -0.5
    for layer in params:
        a = layer["attn"]
        xn = _layer_norm_ref(x, a["ln_g"], a["ln_b"])
        q = xn @ a["wq"]
        kv = xn @ a["wkv"]
        k, v = kv[..., :inner], kv[..., inner:]
        split = lambda t: t.reshape(B, S, heads, dim_head).transpose(0, 2, 1, 3)
        q, k, v = split(q), split(k), split(v)
        dots = jnp.einsum("bhid,bhjd->bhij", q, k) * scale
        dots = jnp.einsum("bhij,hg->bgij", dots, a["mix_pre"])
        attn = jax.nn.softmax(dots, axis=-1)
        attn = jnp.einsum("bhij,hg->bgij", attn, a["mix_post"])
        out = jnp.einsum("bhij,bhjd->bhid", attn, v)
        out = out.transpose(0, 2, 1, 3).reshape(B, S, inner)
        out = out @ a["wo"] + a["bo"]
        x = out * a["ls"] + x
        f = layer["ff"]
        xn = _layer_norm_ref(x, f["ln_g"], f["ln_b"])
        h = jax.nn.gelu(xn @ f["w1"] + f["b1"], approximate=False)
        x = (h @ f["w2"] + f["b2"]) * f["ls"] + x
    return x


if __name__ == "__main__":
    key = jax.random.PRNGKey(0)
    kx, kp = jax.random.split(key)

    # Small shapes chosen to exercise all kernel paths: sequence padding + key
    # masking (S=12 -> S_pad=16), multiple q tiles (tq=8), K/V scratch reuse,
    # FFN row padding (tm=16) and FFN hidden-dim tiling (mlp_dim=256, tile 128).
    B, S = 2, 12
    dim, depth, heads, dim_head, mlp_dim = 32, 2, 4, 8, 256

    x = jax.random.normal(kx, (B, S, dim), jnp.float32)
    params = init_transformer_params(kp, dim=dim, depth=depth, heads=heads,
                                     dim_head=dim_head, mlp_dim=mlp_dim)

    out = transformer_forward(x, params, heads=heads, dim_head=dim_head,
                              tq=8, tm=16, ffn_hidden_tile=128)
    out = jax.block_until_ready(out)

    ref = transformer_reference(x, params, heads=heads, dim_head=dim_head)
    assert out.shape == (B, S, dim)
    err = float(jnp.max(jnp.abs(out - ref)))
    # bf16 matmul operands (f32 accumulation) vs. the pure-f32 reference.
    assert err < 5e-2, f"max abs err {err}"

    print("KERNEL_OK")
</pallas_src>

<mosaic_0001>
module attributes {stable_mosaic.version = 11 : i64} {
  func.func @probe_kernel(%arg0: i32, %arg1: memref<8x128xf32, #tpu.memory_space<vmem>>, %arg2: memref<8x128xf32, #tpu.memory_space<vmem>>) attributes {dimension_semantics = [#tpu.dimension_semantics<arbitrary>], iteration_bounds = array<i64: 1>, scalar_prefetch = 0 : i64, scratch_operands = 0 : i64, tpu.core_type = #tpu.core_type<tc>, window_params = [{pipeline_mode = #tpu.pipeline_mode<synchronous>, transform_indices = @transform_0, window_bounds = array<i64: 8, 128>}, {pipeline_mode = #tpu.pipeline_mode<synchronous>, transform_indices = @transform_1, window_bounds = array<i64: 8, 128>}]} {
    %c0 = arith.constant 0 : index
    %c0_0 = arith.constant 0 : index
    %0 = vector.load %arg1[%c0, %c0_0] : memref<8x128xf32, #tpu.memory_space<vmem>>, vector<8x128xf32>
    %cst = arith.constant 2.000000e+00 : f32
    %1 = vector.broadcast %cst : f32 to vector<8x128xf32>
    %2 = arith.mulf %0, %1 : vector<8x128xf32>
    %c0_1 = arith.constant 0 : index
    %c0_2 = arith.constant 0 : index
    %3 = vector.load %arg2[%c0_1, %c0_2] : memref<8x128xf32, #tpu.memory_space<vmem>>, vector<8x128xf32>
    tpu.vector_store %arg2[%c0_1, %c0_2], %2 {strides = array<i32>} : memref<8x128xf32, #tpu.memory_space<vmem>>, vector<8x128xf32>,
    return
  }
  func.func @transform_0(%arg0: i32) -> (i32, i32) {
    %c0_i32 = arith.constant 0 : i32
    %c0_i32_0 = arith.constant 0 : i32
    %c0_i32_1 = arith.constant 0 : i32
    return %c0_i32, %c0_i32_0 : i32, i32
  }
  func.func @transform_1(%arg0: i32) -> (i32, i32) {
    %c0_i32 = arith.constant 0 : i32
    %c0_i32_0 = arith.constant 0 : i32
    %c0_i32_1 = arith.constant 0 : i32
    return %c0_i32, %c0_i32_0 : i32, i32
  }
}

module attributes {stable_mosaic.version = 11 : i64} {
  func.func @_attn_block_kernel(%arg0: i32, %arg1: i32, %arg2: memref<1x8x32xf32, #tpu.memory_space<vmem>>, %arg3: memref<1x16x32xf32, #tpu.memory_space<vmem>>, %arg4: memref<1x32xf32, #tpu.memory_space<vmem>>, %arg5: memref<1x32xf32, #tpu.memory_space<vmem>>, %arg6: memref<32x32xbf16, #tpu.memory_space<vmem>>, %arg7: memref<32x64xbf16, #tpu.memory_space<vmem>>, %arg8: memref<4x1x32xf32, #tpu.memory_space<vmem>>, %arg9: memref<4x1x32xf32, #tpu.memory_space<vmem>>, %arg10: memref<32x32xbf16, #tpu.memory_space<vmem>>, %arg11: memref<1x32xf32, #tpu.memory_space<vmem>>, %arg12: memref<1x8x32xf32, #tpu.memory_space<vmem>>, %arg13: memref<16x32xbf16, #tpu.memory_space<vmem>>, %arg14: memref<16x32xbf16, #tpu.memory_space<vmem>>) attributes {dimension_semantics = [#tpu.dimension_semantics<parallel>, #tpu.dimension_semantics<arbitrary>], iteration_bounds = array<i64: 2, 2>, scalar_prefetch = 0 : i64, scratch_operands = 2 : i64, tpu.core_type = #tpu.core_type<tc>, window_params = [{transform_indices = @transform_0, window_bounds = array<i64: 1, 8, 32>}, {transform_indices = @transform_1, window_bounds = array<i64: 1, 16, 32>}, {pipeline_mode = #tpu.pipeline_mode<synchronous>, transform_indices = @transform_2, window_bounds = array<i64: 1, 32>}, {pipeline_mode = #tpu.pipeline_mode<synchronous>, transform_indices = @transform_3, window_bounds = array<i64: 1, 32>}, {pipeline_mode = #tpu.pipeline_mode<synchronous>, transform_indices = @transform_4, window_bounds = array<i64: 32, 32>}, {pipeline_mode = #tpu.pipeline_mode<synchronous>, transform_indices = @transform_5, window_bounds = array<i64: 32, 64>}, {pipeline_mode = #tpu.pipeline_mode<synchronous>, transform_indices = @transform_6, window_bounds = array<i64: 4, 1, 32>}, {pipeline_mode = #tpu.pipeline_mode<synchronous>, transform_indices = @transform_7, window_bounds = array<i64: 4, 1, 32>}, {pipeline_mode = #tpu.pipeline_mode<synchronous>, transform_indices = @transform_8, window_bounds = array<i64: 32, 32>}, {pipeline_mode = #tpu.pipeline_mode<synchronous>, transform_indices = @transform_9, window_bounds = array<i64: 1, 32>}, {transform_indices = @transform_10, window_bounds = array<i64: 1, 8, 32>}]} {
    %c0_i32 = arith.constant 0 : i32
    %0 = arith.cmpi eq, %arg1, %c0_i32 : i32
    %1 = arith.extui %0 : i1 to i32
    %c0_i32_0 = arith.constant 0 : i32
    %2 = arith.cmpi ne, %1, %c0_i32_0 : i32
    scf.if %2 {
      %c0_68 = arith.constant 0 : index
      %c0_69 = arith.constant 0 : index
      %c0_70 = arith.constant 0 : index
      %156 = vector.load %arg3[%c0_68, %c0_69, %c0_70] : memref<1x16x32xf32, #tpu.memory_space<vmem>>, vector<1x16x32xf32>
      %157 = vector.shape_cast %156 : vector<1x16x32xf32> to vector<16x32xf32>
      %cst_71 = arith.constant dense<0.000000e+00> : vector<16xf32>
      %158 = vector.multi_reduction <add>, %157, %cst_71 [1] : vector<16x32xf32> to vector<16xf32>
      %159 = vector.shape_cast %158 : vector<16xf32> to vector<16x1xf32>
      %cst_72 = arith.constant 3.200000e+01 : f32
      %160 = vector.broadcast %cst_72 : f32 to vector<16x1xf32>
      %161 = arith.divf %159, %160 : vector<16x1xf32>
      %162 = vector.broadcast %161 : vector<16x1xf32> to vector<16x32xf32>
      %163 = arith.subf %157, %162 : vector<16x32xf32>
      %164 = arith.mulf %163, %163 : vector<16x32xf32>
      %cst_73 = arith.constant dense<0.000000e+00> : vector<16xf32>
      %165 = vector.multi_reduction <add>, %164, %cst_73 [1] : vector<16x32xf32> to vector<16xf32>
      %166 = vector.shape_cast %165 : vector<16xf32> to vector<16x1xf32>
      %cst_74 = arith.constant 3.200000e+01 : f32
      %167 = vector.broadcast %cst_74 : f32 to vector<16x1xf32>
      %168 = arith.divf %166, %167 : vector<16x1xf32>
      %169 = vector.broadcast %161 : vector<16x1xf32> to vector<16x32xf32>
      %170 = arith.subf %157, %169 : vector<16x32xf32>
      %cst_75 = arith.constant 9.99999974E-6 : f32
      %171 = vector.broadcast %cst_75 : f32 to vector<16x1xf32>
      %172 = arith.addf %168, %171 : vector<16x1xf32>
      %173 = math.rsqrt %172 : vector<16x1xf32>
      %174 = vector.broadcast %173 : vector<16x1xf32> to vector<16x32xf32>
      %175 = arith.mulf %170, %174 : vector<16x32xf32>
      %c0_76 = arith.constant 0 : index
      %c0_77 = arith.constant 0 : index
      %176 = vector.load %arg4[%c0_76, %c0_77] : memref<1x32xf32, #tpu.memory_space<vmem>>, vector<1x32xf32>
      %177 = vector.broadcast %176 : vector<1x32xf32> to vector<16x32xf32>
      %178 = arith.mulf %175, %177 : vector<16x32xf32>
      %c0_78 = arith.constant 0 : index
      %c0_79 = arith.constant 0 : index
      %179 = vector.load %arg5[%c0_78, %c0_79] : memref<1x32xf32, #tpu.memory_space<vmem>>, vector<1x32xf32>
      %180 = vector.broadcast %179 : vector<1x32xf32> to vector<16x32xf32>
      %181 = arith.addf %178, %180 : vector<16x32xf32>
      %182 = arith.truncf %181 : vector<16x32xf32> to vector<16x32xbf16>
      %c0_80 = arith.constant 0 : index
      %c0_81 = arith.constant 0 : index
      %183 = vector.load %arg7[%c0_80, %c0_81] : memref<32x64xbf16, #tpu.memory_space<vmem>>, vector<32x64xbf16>
      %cst_82 = arith.constant dense<0.000000e+00> : vector<16x64xf32>
      %184 = tpu.matmul %182, %183, %cst_82 {dimension_numbers = #tpu.dot_dimension_numbers<[1], [0], [0], [1], [0, 0, 1, 1], [], []>} : vector<16x32xbf16>, vector<32x64xbf16>, vector<16x64xf32> -> vector<16x64xf32>
      %185 = vector.extract_strided_slice %184 {offsets = [0, 0], sizes = [16, 32], strides = [1, 1]} : vector<16x64xf32> to vector<16x32xf32>
      %186 = arith.truncf %185 : vector<16x32xf32> to vector<16x32xbf16>
      %c0_83 = arith.constant 0 : index
      %c0_84 = arith.constant 0 : index
      %187 = vector.load %arg13[%c0_83, %c0_84] : memref<16x32xbf16, #tpu.memory_space<vmem>>, vector<16x32xbf16>
      tpu.vector_store %arg13[%c0_83, %c0_84], %186 {strides = array<i32>} : memref<16x32xbf16, #tpu.memory_space<vmem>>, vector<16x32xbf16>,
      %188 = vector.extract_strided_slice %184 {offsets = [0, 32], sizes = [16, 32], strides = [1, 1]} : vector<16x64xf32> to vector<16x32xf32>
      %189 = arith.truncf %188 : vector<16x32xf32> to vector<16x32xbf16>
      %c0_85 = arith.constant 0 : index
      %c0_86 = arith.constant 0 : index
      %190 = vector.load %arg14[%c0_85, %c0_86] : memref<16x32xbf16, #tpu.memory_space<vmem>>, vector<16x32xbf16>
      tpu.vector_store %arg14[%c0_85, %c0_86], %189 {strides = array<i32>} : memref<16x32xbf16, #tpu.memory_space<vmem>>, vector<16x32xbf16>,
    } else {
    }
    %c0 = arith.constant 0 : index
    %c0_1 = arith.constant 0 : index
    %c0_2 = arith.constant 0 : index
    %3 = vector.load %arg2[%c0, %c0_1, %c0_2] : memref<1x8x32xf32, #tpu.memory_space<vmem>>, vector<1x8x32xf32>
    %4 = vector.shape_cast %3 : vector<1x8x32xf32> to vector<8x32xf32>
    %cst = arith.constant dense<0.000000e+00> : vector<8xf32>
    %5 = vector.multi_reduction <add>, %4, %cst [1] : vector<8x32xf32> to vector<8xf32>
    %6 = vector.shape_cast %5 : vector<8xf32> to vector<8x1xf32>
    %cst_3 = arith.constant 3.200000e+01 : f32
    %7 = vector.broadcast %cst_3 : f32 to vector<8x1xf32>
    %8 = arith.divf %6, %7 : vector<8x1xf32>
    %9 = vector.broadcast %8 : vector<8x1xf32> to vector<8x32xf32>
    %10 = arith.subf %4, %9 : vector<8x32xf32>
    %11 = arith.mulf %10, %10 : vector<8x32xf32>
    %cst_4 = arith.constant dense<0.000000e+00> : vector<8xf32>
    %12 = vector.multi_reduction <add>, %11, %cst_4 [1] : vector<8x32xf32> to vector<8xf32>
    %13 = vector.shape_cast %12 : vector<8xf32> to vector<8x1xf32>
    %cst_5 = arith.constant 3.200000e+01 : f32
    %14 = vector.broadcast %cst_5 : f32 to vector<8x1xf32>
    %15 = arith.divf %13, %14 : vector<8x1xf32>
    %16 = vector.broadcast %8 : vector<8x1xf32> to vector<8x32xf32>
    %17 = arith.subf %4, %16 : vector<8x32xf32>
    %cst_6 = arith.constant 9.99999974E-6 : f32
    %18 = vector.broadcast %cst_6 : f32 to vector<8x1xf32>
    %19 = arith.addf %15, %18 : vector<8x1xf32>
    %20 = math.rsqrt %19 : vector<8x1xf32>
    %21 = vector.broadcast %20 : vector<8x1xf32> to vector<8x32xf32>
    %22 = arith.mulf %17, %21 : vector<8x32xf32>
    %c0_7 = arith.constant 0 : index
    %c0_8 = arith.constant 0 : index
    %23 = vector.load %arg4[%c0_7, %c0_8] : memref<1x32xf32, #tpu.memory_space<vmem>>, vector<1x32xf32>
    %24 = vector.broadcast %23 : vector<1x32xf32> to vector<8x32xf32>
    %25 = arith.mulf %22, %24 : vector<8x32xf32>
    %c0_9 = arith.constant 0 : index
    %c0_10 = arith.constant 0 : index
    %26 = vector.load %arg5[%c0_9, %c0_10] : memref<1x32xf32, #tpu.memory_space<vmem>>, vector<1x32xf32>
    %27 = vector.broadcast %26 : vector<1x32xf32> to vector<8x32xf32>
    %28 = arith.addf %25, %27 : vector<8x32xf32>
    %29 = arith.truncf %28 : vector<8x32xf32> to vector<8x32xbf16>
    %c0_11 = arith.constant 0 : index
    %c0_12 = arith.constant 0 : index
    %30 = vector.load %arg6[%c0_11, %c0_12] : memref<32x32xbf16, #tpu.memory_space<vmem>>, vector<32x32xbf16>
    %cst_13 = arith.constant dense<0.000000e+00> : vector<8x32xf32>
    %31 = tpu.matmul %29, %30, %cst_13 {dimension_numbers = #tpu.dot_dimension_numbers<[1], [0], [0], [1], [0, 0, 1, 1], [], []>} : vector<8x32xbf16>, vector<32x32xbf16>, vector<8x32xf32> -> vector<8x32xf32>
    %c0_14 = arith.constant 0 : index
    %c0_15 = arith.constant 0 : index
    %32 = vector.load %arg13[%c0_14, %c0_15] : memref<16x32xbf16, #tpu.memory_space<vmem>>, vector<16x32xbf16>
    %c0_16 = arith.constant 0 : index
    %c0_17 = arith.constant 0 : index
    %33 = vector.load %arg14[%c0_16, %c0_17] : memref<16x32xbf16, #tpu.memory_space<vmem>>, vector<16x32xbf16>
    %34 = tpu.iota {dimensions = array<i32: 1>} : vector<1x16xi32>
    %c12_i32 = arith.constant 12 : i32
    %35 = vector.broadcast %c12_i32 : i32 to vector<1x16xi32>
    %36 = arith.cmpi slt, %34, %35 : vector<1x16xi32>
    %cst_18 = arith.constant 0.000000e+00 : f32
    %37 = vector.broadcast %cst_18 : f32 to vector<8x32xf32>
    %c0_19 = arith.constant 0 : index
    %c0_20 = arith.constant 0 : index
    %c0_21 = arith.constant 0 : index
    %38 = vector.load %arg8[%c0_19, %c0_20, %c0_21] : memref<4x1x32xf32, #tpu.memory_space<vmem>>, vector<1x1x32xf32>
    %39 = vector.shape_cast %38 : vector<1x1x32xf32> to vector<1x32xf32>
    %40 = vector.broadcast %39 : vector<1x32xf32> to vector<8x32xf32>
    %41 = arith.mulf %31, %40 : vector<8x32xf32>
    %42 = arith.truncf %41 : vector<8x32xf32> to vector<8x32xbf16>
    %cst_22 = arith.constant dense<0.000000e+00> : vector<8x16xf32>
    %43 = tpu.matmul %42, %32, %cst_22 {dimension_numbers = #tpu.dot_dimension_numbers<[1], [1], [0], [0], [0, 0, 1, 0], [], []>} : vector<8x32xbf16>, vector<16x32xbf16>, vector<8x16xf32> -> vector<8x16xf32>
    %cst_23 = arith.constant -1.000000e+30 : f32
    %44 = vector.shape_cast %36 : vector<1x16xi1> to vector<1x16xi1>
    %45 = vector.broadcast %44 : vector<1x16xi1> to vector<8x16xi1>
    %46 = vector.broadcast %cst_23 : f32 to vector<8x16xf32>
    %47 = arith.select %45, %43, %46 : vector<8x16xi1>, vector<8x16xf32>
    %cst_24 = arith.constant dense<0xFF800000> : vector<8xf32>
    %48 = vector.multi_reduction <maximumf>, %47, %cst_24 [1] : vector<8x16xf32> to vector<8xf32>
    %49 = vector.shape_cast %48 : vector<8xf32> to vector<8x1xf32>
    %50 = vector.broadcast %49 : vector<8x1xf32> to vector<8x16xf32>
    %51 = arith.subf %47, %50 : vector<8x16xf32>
    %52 = math.exp %51 : vector<8x16xf32>
    %cst_25 = arith.constant dense<0.000000e+00> : vector<8xf32>
    %53 = vector.multi_reduction <add>, %52, %cst_25 [1] : vector<8x16xf32> to vector<8xf32>
    %54 = vector.shape_cast %53 : vector<8xf32> to vector<8x1xf32>
    %55 = tpu.reciprocal %54 {approx = true} : vector<8x1xf32> -> vector<8x1xf32>
    %56 = vector.broadcast %55 : vector<8x1xf32> to vector<8x16xf32>
    %57 = arith.mulf %52, %56 : vector<8x16xf32>
    %58 = arith.truncf %57 : vector<8x16xf32> to vector<8x16xbf16>
    %cst_26 = arith.constant dense<0.000000e+00> : vector<8x32xf32>
    %59 = tpu.matmul %58, %33, %cst_26 {dimension_numbers = #tpu.dot_dimension_numbers<[1], [0], [0], [1], [0, 0, 1, 1], [], []>} : vector<8x16xbf16>, vector<16x32xbf16>, vector<8x32xf32> -> vector<8x32xf32>
    %c0_27 = arith.constant 0 : index
    %c0_28 = arith.constant 0 : index
    %c0_29 = arith.constant 0 : index
    %60 = vector.load %arg9[%c0_27, %c0_28, %c0_29] : memref<4x1x32xf32, #tpu.memory_space<vmem>>, vector<1x1x32xf32>
    %61 = vector.shape_cast %60 : vector<1x1x32xf32> to vector<1x32xf32>
    %62 = vector.broadcast %61 : vector<1x32xf32> to vector<8x32xf32>
    %63 = arith.mulf %59, %62 : vector<8x32xf32>
    %64 = arith.addf %37, %63 : vector<8x32xf32>
    %c1 = arith.constant 1 : index
    %c0_30 = arith.constant 0 : index
    %c0_31 = arith.constant 0 : index
    %65 = vector.load %arg8[%c1, %c0_30, %c0_31] : memref<4x1x32xf32, #tpu.memory_space<vmem>>, vector<1x1x32xf32>
    %66 = vector.shape_cast %65 : vector<1x1x32xf32> to vector<1x32xf32>
    %67 = vector.broadcast %66 : vector<1x32xf32> to vector<8x32xf32>
    %68 = arith.mulf %31, %67 : vector<8x32xf32>
    %69 = arith.truncf %68 : vector<8x32xf32> to vector<8x32xbf16>
    %cst_32 = arith.constant dense<0.000000e+00> : vector<8x16xf32>
    %70 = tpu.matmul %69, %32, %cst_32 {dimension_numbers = #tpu.dot_dimension_numbers<[1], [1], [0], [0], [0, 0, 1, 0], [], []>} : vector<8x32xbf16>, vector<16x32xbf16>, vector<8x16xf32> -> vector<8x16xf32>
    %cst_33 = arith.constant -1.000000e+30 : f32
    %71 = vector.shape_cast %36 : vector<1x16xi1> to vector<1x16xi1>
    %72 = vector.broadcast %71 : vector<1x16xi1> to vector<8x16xi1>
    %73 = vector.broadcast %cst_33 : f32 to vector<8x16xf32>
    %74 = arith.select %72, %70, %73 : vector<8x16xi1>, vector<8x16xf32>
    %cst_34 = arith.constant dense<0xFF800000> : vector<8xf32>
    %75 = vector.multi_reduction <maximumf>, %74, %cst_34 [1] : vector<8x16xf32> to vector<8xf32>
    %76 = vector.shape_cast %75 : vector<8xf32> to vector<8x1xf32>
    %77 = vector.broadcast %76 : vector<8x1xf32> to vector<8x16xf32>
    %78 = arith.subf %74, %77 : vector<8x16xf32>
    %79 = math.exp %78 : vector<8x16xf32>
    %cst_35 = arith.constant dense<0.000000e+00> : vector<8xf32>
    %80 = vector.multi_reduction <add>, %79, %cst_35 [1] : vector<8x16xf32> to vector<8xf32>
    %81 = vector.shape_cast %80 : vector<8xf32> to vector<8x1xf32>
    %82 = tpu.reciprocal %81 {approx = true} : vector<8x1xf32> -> vector<8x1xf32>
    %83 = vector.broadcast %82 : vector<8x1xf32> to vector<8x16xf32>
    %84 = arith.mulf %79, %83 : vector<8x16xf32>
    %85 = arith.truncf %84 : vector<8x16xf32> to vector<8x16xbf16>
    %cst_36 = arith.constant dense<0.000000e+00> : vector<8x32xf32>
    %86 = tpu.matmul %85, %33, %cst_36 {dimension_numbers = #tpu.dot_dimension_numbers<[1], [0], [0], [1], [0, 0, 1, 1], [], []>} : vector<8x16xbf16>, vector<16x32xbf16>, vector<8x32xf32> -> vector<8x32xf32>
    %c1_37 = arith.constant 1 : index
    %c0_38 = arith.constant 0 : index
    %c0_39 = arith.constant 0 : index
    %87 = vector.load %arg9[%c1_37, %c0_38, %c0_39] : memref<4x1x32xf32, #tpu.memory_space<vmem>>, vector<1x1x32xf32>
    %88 = vector.shape_cast %87 : vector<1x1x32xf32> to vector<1x32xf32>
    %89 = vector.broadcast %88 : vector<1x32xf32> to vector<8x32xf32>
    %90 = arith.mulf %86, %89 : vector<8x32xf32>
    %91 = arith.addf %64, %90 : vector<8x32xf32>
    %c2 = arith.constant 2 : index
    %c0_40 = arith.constant 0 : index
    %c0_41 = arith.constant 0 : index
    %92 = vector.load %arg8[%c2, %c0_40, %c0_41] : memref<4x1x32xf32, #tpu.memory_space<vmem>>, vector<1x1x32xf32>
    %93 = vector.shape_cast %92 : vector<1x1x32xf32> to vector<1x32xf32>
    %94 = vector.broadcast %93 : vector<1x32xf32> to vector<8x32xf32>
    %95 = arith.mulf %31, %94 : vector<8x32xf32>
    %96 = arith.truncf %95 : vector<8x32xf32> to vector<8x32xbf16>
    %cst_42 = arith.constant dense<0.000000e+00> : vector<8x16xf32>
    %97 = tpu.matmul %96, %32, %cst_42 {dimension_numbers = #tpu.dot_dimension_numbers<[1], [1], [0], [0], [0, 0, 1, 0], [], []>} : vector<8x32xbf16>, vector<16x32xbf16>, vector<8x16xf32> -> vector<8x16xf32>
    %cst_43 = arith.constant -1.000000e+30 : f32
    %98 = vector.shape_cast %36 : vector<1x16xi1> to vector<1x16xi1>
    %99 = vector.broadcast %98 : vector<1x16xi1> to vector<8x16xi1>
    %100 = vector.broadcast %cst_43 : f32 to vector<8x16xf32>
    %101 = arith.select %99, %97, %100 : vector<8x16xi1>, vector<8x16xf32>
    %cst_44 = arith.constant dense<0xFF800000> : vector<8xf32>
    %102 = vector.multi_reduction <maximumf>, %101, %cst_44 [1] : vector<8x16xf32> to vector<8xf32>
    %103 = vector.shape_cast %102 : vector<8xf32> to vector<8x1xf32>
    %104 = vector.broadcast %103 : vector<8x1xf32> to vector<8x16xf32>
    %105 = arith.subf %101, %104 : vector<8x16xf32>
    %106 = math.exp %105 : vector<8x16xf32>
    %cst_45 = arith.constant dense<0.000000e+00> : vector<8xf32>
    %107 = vector.multi_reduction <add>, %106, %cst_45 [1] : vector<8x16xf32> to vector<8xf32>
    %108 = vector.shape_cast %107 : vector<8xf32> to vector<8x1xf32>
    %109 = tpu.reciprocal %108 {approx = true} : vector<8x1xf32> -> vector<8x1xf32>
    %110 = vector.broadcast %109 : vector<8x1xf32> to vector<8x16xf32>
    %111 = arith.mulf %106, %110 : vector<8x16xf32>
    %112 = arith.truncf %111 : vector<8x16xf32> to vector<8x16xbf16>
    %cst_46 = arith.constant dense<0.000000e+00> : vector<8x32xf32>
    %113 = tpu.matmul %112, %33, %cst_46 {dimension_numbers = #tpu.dot_dimension_numbers<[1], [0], [0], [1], [0, 0, 1, 1], [], []>} : vector<8x16xbf16>, vector<16x32xbf16>, vector<8x32xf32> -> vector<8x32xf32>
    %c2_47 = arith.constant 2 : index
    %c0_48 = arith.constant 0 : index
    %c0_49 = arith.constant 0 : index
    %114 = vector.load %arg9[%c2_47, %c0_48, %c0_49] : memref<4x1x32xf32, #tpu.memory_space<vmem>>, vector<1x1x32xf32>
    %115 = vector.shape_cast %114 : vector<1x1x32xf32> to vector<1x32xf32>
    %116 = vector.broadcast %115 : vector<1x32xf32> to vector<8x32xf32>
    %117 = arith.mulf %113, %116 : vector<8x32xf32>
    %118 = arith.addf %91, %117 : vector<8x32xf32>
    %c3 = arith.constant 3 : index
    %c0_50 = arith.constant 0 : index
    %c0_51 = arith.constant 0 : index
    %119 = vector.load %arg8[%c3, %c0_50, %c0_51] : memref<4x1x32xf32, #tpu.memory_space<vmem>>, vector<1x1x32xf32>
    %120 = vector.shape_cast %119 : vector<1x1x32xf32> to vector<1x32xf32>
    %121 = vector.broadcast %120 : vector<1x32xf32> to vector<8x32xf32>
    %122 = arith.mulf %31, %121 : vector<8x32xf32>
    %123 = arith.truncf %122 : vector<8x32xf32> to vector<8x32xbf16>
    %cst_52 = arith.constant dense<0.000000e+00> : vector<8x16xf32>
    %124 = tpu.matmul %123, %32, %cst_52 {dimension_numbers = #tpu.dot_dimension_numbers<[1], [1], [0], [0], [0, 0, 1, 0], [], []>} : vector<8x32xbf16>, vector<16x32xbf16>, vector<8x16xf32> -> vector<8x16xf32>
    %cst_53 = arith.constant -1.000000e+30 : f32
    %125 = vector.shape_cast %36 : vector<1x16xi1> to vector<1x16xi1>
    %126 = vector.broadcast %125 : vector<1x16xi1> to vector<8x16xi1>
    %127 = vector.broadcast %cst_53 : f32 to vector<8x16xf32>
    %128 = arith.select %126, %124, %127 : vector<8x16xi1>, vector<8x16xf32>
    %cst_54 = arith.constant dense<0xFF800000> : vector<8xf32>
    %129 = vector.multi_reduction <maximumf>, %128, %cst_54 [1] : vector<8x16xf32> to vector<8xf32>
    %130 = vector.shape_cast %129 : vector<8xf32> to vector<8x1xf32>
    %131 = vector.broadcast %130 : vector<8x1xf32> to vector<8x16xf32>
    %132 = arith.subf %128, %131 : vector<8x16xf32>
    %133 = math.exp %132 : vector<8x16xf32>
    %cst_55 = arith.constant dense<0.000000e+00> : vector<8xf32>
    %134 = vector.multi_reduction <add>, %133, %cst_55 [1] : vector<8x16xf32> to vector<8xf32>
    %135 = vector.shape_cast %134 : vector<8xf32> to vector<8x1xf32>
    %136 = tpu.reciprocal %135 {approx = true} : vector<8x1xf32> -> vector<8x1xf32>
    %137 = vector.broadcast %136 : vector<8x1xf32> to vector<8x16xf32>
    %138 = arith.mulf %133, %137 : vector<8x16xf32>
    %139 = arith.truncf %138 : vector<8x16xf32> to vector<8x16xbf16>
    %cst_56 = arith.constant dense<0.000000e+00> : vector<8x32xf32>
    %140 = tpu.matmul %139, %33, %cst_56 {dimension_numbers = #tpu.dot_dimension_numbers<[1], [0], [0], [1], [0, 0, 1, 1], [], []>} : vector<8x16xbf16>, vector<16x32xbf16>, vector<8x32xf32> -> vector<8x32xf32>
    %c3_57 = arith.constant 3 : index
    %c0_58 = arith.constant 0 : index
    %c0_59 = arith.constant 0 : index
    %141 = vector.load %arg9[%c3_57, %c0_58, %c0_59] : memref<4x1x32xf32, #tpu.memory_space<vmem>>, vector<1x1x32xf32>
    %142 = vector.shape_cast %141 : vector<1x1x32xf32> to vector<1x32xf32>
    %143 = vector.broadcast %142 : vector<1x32xf32> to vector<8x32xf32>
    %144 = arith.mulf %140, %143 : vector<8x32xf32>
    %145 = arith.addf %118, %144 : vector<8x32xf32>
    %146 = arith.truncf %145 : vector<8x32xf32> to vector<8x32xbf16>
    %c0_60 = arith.constant 0 : index
    %c0_61 = arith.constant 0 : index
    %147 = vector.load %arg10[%c0_60, %c0_61] : memref<32x32xbf16, #tpu.memory_space<vmem>>, vector<32x32xbf16>
    %cst_62 = arith.constant dense<0.000000e+00> : vector<8x32xf32>
    %148 = tpu.matmul %146, %147, %cst_62 {dimension_numbers = #tpu.dot_dimension_numbers<[1], [0], [0], [1], [0, 0, 1, 1], [], []>} : vector<8x32xbf16>, vector<32x32xbf16>, vector<8x32xf32> -> vector<8x32xf32>
    %c0_63 = arith.constant 0 : index
    %c0_64 = arith.constant 0 : index
    %149 = vector.load %arg11[%c0_63, %c0_64] : memref<1x32xf32, #tpu.memory_space<vmem>>, vector<1x32xf32>
    %150 = vector.broadcast %149 : vector<1x32xf32> to vector<8x32xf32>
    %151 = arith.addf %148, %150 : vector<8x32xf32>
    %152 = arith.addf %151, %4 : vector<8x32xf32>
    %c0_65 = arith.constant 0 : index
    %c0_66 = arith.constant 0 : index
    %c0_67 = arith.constant 0 : index
    %153 = vector.load %arg12[%c0_65, %c0_66, %c0_67] : memref<1x8x32xf32, #tpu.memory_space<vmem>>, vector<1x8x32xf32>
    %154 = vector.shape_cast %153 : vector<1x8x32xf32> to vector<8x32xf32>
    %155 = vector.shape_cast %152 : vector<8x32xf32> to vector<1x8x32xf32>
    tpu.vector_store %arg12[%c0_65, %c0_66, %c0_67], %155 {strides = array<i32>} : memref<1x8x32xf32, #tpu.memory_space<vmem>>, vector<1x8x32xf32>,
    return
  }
  func.func @transform_0(%arg0: i32, %arg1: i32) -> (i32, i32, i32) {
    %c0_i32 = arith.constant 0 : i32
    %c0_i32_0 = arith.constant 0 : i32
    return %arg0, %arg1, %c0_i32 : i32, i32, i32
  }
  func.func @transform_1(%arg0: i32, %arg1: i32) -> (i32, i32, i32) {
    %c0_i32 = arith.constant 0 : i32
    %c0_i32_0 = arith.constant 0 : i32
    %c0_i32_1 = arith.constant 0 : i32
    return %arg0, %c0_i32, %c0_i32_0 : i32, i32, i32
  }
  func.func @transform_2(%arg0: i32, %arg1: i32) -> (i32, i32) {
    %c0_i32 = arith.constant 0 : i32
    %c0_i32_0 = arith.constant 0 : i32
    %c0_i32_1 = arith.constant 0 : i32
    return %c0_i32, %c0_i32_0 : i32, i32
  }
  func.func @transform_3(%arg0: i32, %arg1: i32) -> (i32, i32) {
    %c0_i32 = arith.constant 0 : i32
    %c0_i32_0 = arith.constant 0 : i32
    %c0_i32_1 = arith.constant 0 : i32
    return %c0_i32, %c0_i32_0 : i32, i32
  }
  func.func @transform_4(%arg0: i32, %arg1: i32) -> (i32, i32) {
    %c0_i32 = arith.constant 0 : i32
    %c0_i32_0 = arith.constant 0 : i32
    %c0_i32_1 = arith.constant 0 : i32
    return %c0_i32, %c0_i32_0 : i32, i32
  }
  func.func @transform_5(%arg0: i32, %arg1: i32) -> (i32, i32) {
    %c0_i32 = arith.constant 0 : i32
    %c0_i32_0 = arith.constant 0 : i32
    %c0_i32_1 = arith.constant 0 : i32
    return %c0_i32, %c0_i32_0 : i32, i32
  }
  func.func @transform_6(%arg0: i32, %arg1: i32) -> (i32, i32, i32) {
    %c0_i32 = arith.constant 0 : i32
    %c0_i32_0 = arith.constant 0 : i32
    %c0_i32_1 = arith.constant 0 : i32
    %c0_i32_2 = arith.constant 0 : i32
    return %c0_i32, %c0_i32_0, %c0_i32_1 : i32, i32, i32
  }
  func.func @transform_7(%arg0: i32, %arg1: i32) -> (i32, i32, i32) {
    %c0_i32 = arith.constant 0 : i32
    %c0_i32_0 = arith.constant 0 : i32
    %c0_i32_1 = arith.constant 0 : i32
    %c0_i32_2 = arith.constant 0 : i32
    return %c0_i32, %c0_i32_0, %c0_i32_1 : i32, i32, i32
  }
  func.func @transform_8(%arg0: i32, %arg1: i32) -> (i32, i32) {
    %c0_i32 = arith.constant 0 : i32
    %c0_i32_0 = arith.constant 0 : i32
    %c0_i32_1 = arith.constant 0 : i32
    return %c0_i32, %c0_i32_0 : i32, i32
  }
  func.func @transform_9(%arg0: i32, %arg1: i32) -> (i32, i32) {
    %c0_i32 = arith.constant 0 : i32
    %c0_i32_0 = arith.constant 0 : i32
    %c0_i32_1 = arith.constant 0 : i32
    return %c0_i32, %c0_i32_0 : i32, i32
  }
  func.func @transform_10(%arg0: i32, %arg1: i32) -> (i32, i32, i32) {
    %c0_i32 = arith.constant 0 : i32
    %c0_i32_0 = arith.constant 0 : i32
    return %arg0, %arg1, %c0_i32 : i32, i32, i32
  }
}

</mosaic_0001>

<bundles_post_ra>
// kernel: tpu_custom_call.1
= control target key start
LH: loop header
LB: loop body
LE: loop exit
PB: predicated region body
PF: predicated region fallthrough
CT: control target
= control target key end

     0   :  { %6 = vsyncpa [#allocation3], 0  ;;  %s125_s0 = inlined_call_operand.hbm [shape: f32[8,128], index: 0, kind: input, shape index: {}]   ;;  %s126_s1 = inlined_call_operand.hbm [shape: f32[8,128], index: 1, kind: output, shape index: {}]  }
   0x1   :  { %7 = vsyncpa [#allocation4], 0  ;;  %s89_s6 = smov [#allocation2]   ;;  %s41_s10 = scalar_lea.hbm %s125_s0, 128 }
   0x2   :  { %s14_s7 = sshll.u32 %s89_s6, 4  ;;  %p42_p0 = scmp.ne.s32.totalorder %s125_s0, %s41_s10  ;;  %s15_s7 = int_to_ptr.vmem [resolvable:$true] %s14_s7 }
   0x3   :  { %p45_p1 = scmp.lt.u32.totalorder %s41_s10, %s125_s0 }
   0x5   :  { %p47_p2 = pnand %p45_p1, %p42_p0 }
   0x7   :  { %50 = shalt.err (!%p47_p2)
}
   0x8   :  { %s51_s15 = scalar_lea.vmem %s15_s7, 128  ;;  %p56_p4 = scmp.lt.s32.totalorder %s15_s7, %s15_s7 }
   0x9   :  { %p52_p3 = scmp.ne.s32.totalorder %s15_s7, %s51_s15  ;;  %p57_p5 = scmp.lt.s32.totalorder %s51_s15, %s51_s15 }
   0xb   :  { %p58_p6 = por %p57_p5, %p56_p4 }
   0xd   :  { %p59_p7 = pnand %p58_p6, %p52_p3 }
   0xf   :  { %62 = shalt.err (!%p59_p7)
}
  0x10   :  { %17 = dma.hbm_to_vmem [thread:$0]  %s125_s0, 128, %s15_s7, [#allocation3]  }
  0x11   :  { %85 = dma.done.wait [#allocation3], 128  }
  0x12   :  { %86 = vsyncadd [#allocation3], 4294967168  ;;  %s90_s18 = smov [#allocation5]   ;;  %v21_v0 = vld [vmem:[#allocation2] sm:$0xff] }
  0x13   :  { %s30_s19 = sshll.u32 %s90_s18, 4  ;;  %v22_v1 = vmul.f32 2.0, %v21_v0  ;;  %s31_s19 = int_to_ptr.vmem [resolvable:$true] %s30_s19 }
  0x14   :  { %s63_s20 = scalar_lea.vmem %s31_s19, 128  ;;  %p68_p9 = scmp.lt.s32.totalorder %s31_s19, %s31_s19 }
  0x15   :  { %23 = vst [vmem:[#allocation5] sm:$0xff] %v22_v1  ;;  %p64_p8 = scmp.ne.s32.totalorder %s31_s19, %s63_s20  ;;  %p69_p10 = scmp.lt.s32.totalorder %s63_s20, %s63_s20 }
  0x17   :  { %p70_p11 = por %p69_p10, %p68_p9 }
  0x19   :  { %p71_p12 = pnand %p70_p11, %p64_p8 }
  0x1b   :  { %74 = shalt.err (!%p71_p12)
}
  0x1c   :  { %s75_s23 = scalar_lea.hbm %s126_s1, 128 }
  0x1d   :  { %p76_p13 = scmp.ne.s32.totalorder %s126_s1, %s75_s23  ;;  %p79_p0 = scmp.lt.u32.totalorder %s75_s23, %s126_s1 }
  0x1f   :  { %p81_p1 = pnand %p79_p0, %p76_p13 }
  0x21   :  { %84 = shalt.err (!%p81_p1)
}
  0x22   :  { %33 = dma.vmem_to_hbm [thread:$0]  %s31_s19, 128, %s126_s1, [#allocation4]  }
  0x23   :  { %87 = dma.done.wait [#allocation4], 128  }
  0x24   :  { %88 = vsyncadd [#allocation4], 4294967168 }
  0x25   :  { %37 = vsyncpa [#allocation3], 1 }
  0x26   :  { %38 = vsyncpa [#allocation4], 1 }

// kernel: tpu_custom_call.1
= control target key start
LH: loop header
LB: loop body
LE: loop exit
PB: predicated region body
PF: predicated region fallthrough
CT: control target
= control target key end

     0   :  { %s2515_s0 = inlined_call_operand.hbm [shape: f32[2,16,32], index: 0, kind: input, shape index: {}]   ;;  %s2516_s1 = inlined_call_operand.hbm [shape: f32[2,16,32], index: 1, kind: input, shape index: {}]   ;;  %s2517_s2 = inlined_call_operand.vmem [shape: f32[1,32], index: 2, kind: input, shape index: {}]   ;;  %s2518_s3 = inlined_call_operand.vmem [shape: f32[1,32], index: 3, kind: input, shape index: {}]   ;;  %s2519_s4 = inlined_call_operand.hbm [shape: bf16[32,32], index: 4, kind: input, shape index: {}]   ;;  %s2520_s5 = inlined_call_operand.vmem [shape: bf16[32,64], index: 5, kind: input, shape index: {}]   ;;  %s2521_s6 = inlined_call_operand.vmem [shape: f32[4,1,32], index: 6, kind: input, shape index: {}]   ;;  %s2522_s7 = inlined_call_operand.vmem [shape: f32[4,1,32], index: 7, kind: input, shape index: {}]   ;;  %s2523_s8 = inlined_call_operand.hbm [shape: bf16[32,32], index: 8, kind: input, shape index: {}]   ;;  %s2524_s9 = inlined_call_operand.vmem [shape: f32[1,32], index: 9, kind: input, shape index: {}]   ;;  %s2525_s10 = inlined_call_operand.hbm [shape: f32[2,16,32], index: 10, kind: output, shape index: {}]  }
   0x1   :  { %2537 = sst [smem:[#allocation24_spill]] %s2517_s2 }
   0x2   :  { %2538 = sst [smem:[#allocation25_spill]] %s2518_s3 }
   0x3   :  { %2539 = sst [smem:[#allocation26_spill]] %s2519_s4 }
   0x4   :  { %2540 = sst [smem:[#allocation27_spill]] %s2521_s6 }
   0x5   :  { %2541 = sst [smem:[#allocation28_spill]] %s2522_s7 }
   0x6   :  { %2542 = sst [smem:[#allocation29_spill]] %s2523_s8 }
   0x7   :  { %2543 = sst [smem:[#allocation30_spill]] %s2524_s9 }
   0x8   :  { %2544 = sst [smem:[#allocation31_spill]] %s2525_s10 }
   0x9   :  { %15 = vsyncpa [#allocation5], 0 }
   0xa   :  { %17 = vsyncpa [#allocation5 + $0x1], 0 }
   0xb   :  { %18 = vsyncpa [#allocation8], 0 }
   0xc   :  { %20 = vsyncpa [#allocation8 + $0x1], 0 }
   0xd   :  { %21 = vsyncpa [#allocation11], 0 }
   0xe   :  { %22 = vsyncpa [#allocation6], 0 }
   0xf   :  { %24 = vsyncpa [#allocation6 + $0x1], 0  ;;  %s2016_s13 = smov 0   ;;  %s2018_s14 = smov 0  }
  0x10   :  { %s2020_s15 = smov 0   ;;  %s2022_s16 = smov 0  }
  0x11   :  { %s2024_s17 = smov 0   ;;  %s2026_s18 = smov 0  }
  0x12   :  { %s2028_s19 = smov 0   ;;  %s2030_s20 = smov 0  }
  0x13   :  { %s2032_s21 = smov 0   ;;  %s2034_s22 = smov 0  }
  0x14   :  { %s2036_s23 = smov 0  }
  0x15 LB: > { %2545 = sst [smem:[#allocation18_spill]] %s1933_s20  ;;  %s2070_s24 = sadd.s32 4294967295, %s1945_s23   ;;  %s1945_s23 = sphi %s2036_s23, %s30_s23   ;;  %s1941_s22 = sphi %s2034_s22, %s2595_s22   ;;  %s1937_s21 = sphi %s2032_s21, %s2586_s21   ;;  %s1933_s20 = sphi %s2030_s20, %s2594_s20   ;;  %s1929_s19 = sphi %s2028_s19, %s2585_s19   ;;  %s1925_s18 = sphi %s2026_s18, %s2593_s18   ;;  %s1921_s17 = sphi %s2024_s17, %s2592_s17   ;;  %s1917_s16 = sphi %s2022_s16, %s2591_s16   ;;  %s1913_s15 = sphi %s2020_s15, %s2590_s15   ;;  %s1909_s14 = sphi %s2018_s14, %s2589_s14   ;;  %s1905_s13 = sphi %s2016_s13, %s2588_s13  }
  0x16   : > { %2546 = sst [smem:[#allocation19_spill]] %s1937_s21  ;;  %p90_p0 = scmp.ne.s32.totalorder %s1909_s14, %s1905_s13 }
  0x17   : > { %p2528_p1 = scmp.eq.s32.totalorder %s2070_s24, 0  ;;  %p1374_p2 = scmp.ge.s32.totalorder %s1945_s23, 1 }
  0x18   : > { %p297_p3 = scmp.lt.s32.totalorder %s1945_s23, 5  ;;  %s1947_s27 = smov [#allocation9]  }
  0x19   : > { %p2078_p4 = por %p90_p0, %p2528_p1  ;;  %s315_s28 = sshll.u32 %s1947_s27, 4  ;;  %s316_s28 = int_to_ptr.vmem [resolvable:$true] %s315_s28 }
  0x1a   : > { %p2082_p5 = pnand %p1374_p2, %p297_p3  ;;  %s1948_s30 = smov [#allocation10]  }
  0x1b   : > { %s2547_s25 = scalar_select %p2078_p4, 1, 0 }
  0x1c   : > { %s2548_s26 = scalar_select %p2082_p5, 1, 0 }
  0x1d   : > { %p1544_p6 = pneg %p2082_p5  ;;  %s337_s11 = sshll.u32 %s1948_s30, 4  ;;  %s2094_s11 = int_to_ptr.vmem [resolvable:$true] %s337_s11 }
  0x1e   : > { %s2550_s4 = sld [smem:[#allocation26_spill]] }
  0x1f   : > { %p2090_p7 = pnand %p1544_p6, %p2528_p1 }
  0x21   : > { %p1697_p9 = pneg %p2090_p7 }
  0x24   : > { %s1695_s10 = scalar_lea.hbm %s2550_s4, 256 }
  0x25   : > { %p1696_p8 = scmp.ne.s32.totalorder %s2550_s4, %s1695_s10  ;;  %p1702_p12 = scmp.lt.u32.totalorder %s1695_s10, %s2550_s4 }
  0x27   : > { %p1698_p10 = pnand %p1697_p9, %p1696_p8 }
  0x29   : > { %p1699_p11 = pneg %p1698_p10 }
  0x2b   : > { %p1704_p13 = pnand %p1702_p12, %p1699_p11 }
  0x2d   : > { %1707 = shalt.err (!%p1704_p13)
}
  0x2e   : > { %s1708_s30 = scalar_lea.vmem %s316_s28, 256  ;;  %p1716_p6 = scmp.lt.s32.totalorder %s316_s28, %s316_s28 }
  0x2f   : > { %p1709_p0 = scmp.ne.s32.totalorder %s316_s28, %s1708_s30  ;;  %p1717_p1 = scmp.lt.s32.totalorder %s1708_s30, %s1708_s30 }
  0x31   : > { %p1711_p2 = pnand %p1709_p0, %p1697_p9  ;;  %p1718_p4 = por %p1717_p1, %p1716_p6 }
  0x33   : > { %p1712_p3 = pneg %p1711_p2 }
  0x35   : > { %p1719_p5 = pnand %p1718_p4, %p1712_p3 }
  0x37   : > { %1722 = shalt.err (!%p1719_p5)
}
  0x38   : > { %s1949_s9 = smov 64   ;;  %s1950_s12 = smov 4  }
  0x39   : > { %1547 = dma.hbm_to_vmem [thread:$0]  (!%p2090_p7), %s2550_s4, 256, %s316_s28, [#allocation8], %s1949_s9, %s1949_s9, %s1950_s12  }
  0x3a   : > { %s2551_s8 = sld [smem:[#allocation29_spill]] }
  0x40   : > { %s1723_s27 = scalar_lea.hbm %s2551_s8, 256 }
  0x41   : > { %p1724_p8 = scmp.ne.s32.totalorder %s2551_s8, %s1723_s27  ;;  %p1730_p5 = scmp.lt.u32.totalorder %s1723_s27, %s2551_s8 }
  0x43   : > { %p1726_p1 = pnand %p1724_p8, %p1697_p9 }
  0x45   : > { %p1727_p4 = pneg %p1726_p1 }
  0x47   : > { %p1732_p10 = pnand %p1730_p5, %p1727_p4 }
  0x49   : > { %1735 = shalt.err (!%p1732_p10)
}
  0x4a   : > { %s1736_s28 = scalar_lea.vmem %s2094_s11, 256  ;;  %p1744_p0 = scmp.lt.s32.totalorder %s2094_s11, %s2094_s11 }
  0x4b   : > { %p1737_p11 = scmp.ne.s32.totalorder %s2094_s11, %s1736_s28  ;;  %p1745_p2 = scmp.lt.s32.totalorder %s1736_s28, %s1736_s28 }
  0x4d   : > { %p1739_p12 = pnand %p1737_p11, %p1697_p9  ;;  %p1746_p3 = por %p1745_p2, %p1744_p0 }
  0x4f   : > { %p1740_p13 = pneg %p1739_p12 }
  0x51   : > { %p1747_p6 = pnand %p1746_p3, %p1740_p13 }
  0x53   : > { %1750 = shalt.err (!%p1747_p6)
}
  0x54   : > { %1550 = dma.hbm_to_vmem [thread:$0]  (!%p2090_p7), %s2551_s8, 256, %s2094_s11, [#allocation11], %s1949_s9, %s1949_s9, %s1950_s12  }
  0x55   : > { %s1373_s6 = sadd.s32 4294967294, %s1945_s23   ;;  %s39_s29 = sadd.s32 1, %s1937_s21 }
  0x56   : > { %p40_p9 = scmp.ge.s32.totalorder %s39_s29, 2  ;;  %s42_s7 = sadd.s32 1, %s1941_s22 }
  0x57   : > { %s51_s10 = sadd.s32 1, %s1925_s18  ;;  %p58_p8 = scmp.ne.s32.totalorder %s1925_s18, %s1921_s17 }
  0x58   : > { %s2597_s29 = smov (%p40_p9, %s39_s29), 0  ;;  %s2599_s7 = smov (!%p40_p9, %s42_s7), %s1941_s22 }
  0x59   : > { %2552 = sst [smem:[#allocation20_spill]] %s2597_s29  ;;  %s47_s11 = ssub.s32 %s1937_s21, %s2597_s29 }
  0x5a   : > { %p59_p7 = scmp.eq.s32.totalorder %s1945_s23, 0  ;;  %p44_p1 = scmp.ge.s32.totalorder %s2599_s7, 2 }
  0x5b   : > { %p64_p4 = scmp.ne.s32.totalorder %s1921_s17, %s1917_s16  ;;  %s77_s12 = sadd.s32 1, %s1913_s15 }
  0x5c   : > { %p2162_p5 = por %p59_p7, %p58_p8  ;;  %s2601_s7 = smov (%p44_p1, %s2599_s7), 0 }
  0x5d   : > { %2554 = sst [smem:[#allocation21_spill]] %s2601_s7  ;;  %p2555_p10 = scmp.eq.s32.totalorder %s2070_s24, 0 }
  0x5e   : > { %p84_p12 = scmp.ne.s32.totalorder %s1913_s15, %s1909_s14  ;;  %s46_s13 = ssub.s32 %s1941_s22, %s2601_s7 }
  0x5f   : > { %p2174_p11 = por %p2555_p10, %p64_p4  ;;  %p284_p13 = scmp.eq.s32.totalorder %s2070_s24, 3 }
  0x60   : > { %s48_s27 = sor.u32 %s47_s11, %s46_s13  ;;  %p75_p0 = scmp.eq.s32.totalorder %s46_s13, 0 }
  0x61   : > { %s2556_s20 = scalar_select %p2174_p11, 1, 0 }
  0x62   : > { %p49_p2 = scmp.eq.s32.totalorder %s48_s27, 0  ;;  %p2185_p3 = por %p84_p12, %p59_p7 }
  0x63   : > { %s2190_s28 = scalar_select %p75_p0, %s1913_s15, %s77_s12  }
  0x64   : > { %s2193_s2 = scalar_select %p49_p2, %s1925_s18, %s51_s10  }
  0x65   : > { %2558 = sst [smem:[#allocation22_spill]] %s2190_s28  ;;  %p2198_p6 = por %p284_p13, %p58_p8 }
  0x66   : > { %2559 = sst [smem:[#allocation23_spill]] %s2193_s2  ;;  %p290_p9 = scmp.eq.s32.totalorder %s1373_s6, 3 }
  0x67   : > { %s2560_s3 = scalar_select %p2198_p6, 1, 0 }
  0x68   : > { %p1564_p1 = scmp.lt.s32.totalorder %s1945_s23, 4  ;;  %s354_s11 = sand.u32 1, %s1925_s18  }
  0x69   : > { %p2207_p7 = por %p290_p9, %p64_p4  ;;  %s1378_s12 = sshll.u32 %s354_s11, 3 }
  0x6a   : > { %s1379_s27 = sshll.u32 %s1941_s22, 1  ;;  %s358_s8 = scalar_lea.vmem [#allocation4], %s1378_s12 }
  0x6b   : > { %s2561_s13 = scalar_select %p2207_p7, 1, 0 }
  0x6c   : > { %s363_s4 = sadd.s32 %s1937_s21, %s1379_s27  ;;  %s367_s7 = sshll.u32 %s358_s8, 4  ;;  %s2218_s7 = int_to_ptr.vmem [resolvable:$true] %s367_s7 }
  0x6d   : > { %s1380_s10 = sshll.u32 %s363_s4, 7  ;;  %p2222_p8 = pnand %p1564_p1, %p2162_p5 }
  0x6e   : > { %s2216_s28 = scalar_lea.hbm %s2515_s0, %s1380_s10  ;;  %p2228_p4 = pnand %p1564_p1, %p2185_p3 }
  0x6f   : > { %s374_s8 = sand.u32 1, %s1945_s23   ;;  %s376_s29 = sand.u32 1, %s1913_s15  }
  0x70   : > { %s355_s2 = scalar_lea.sflag [#allocation5], %s354_s11  ;;  %s1751_s12 = scalar_lea.hbm %s2216_s28, 128 }
  0x71   : > { %p1752_p10 = scmp.ne.s32.totalorder %s2216_s28, %s1751_s12  ;;  %p1753_p12 = pneg %p2222_p8 }
  0x72   : > { %s1756_s30 = scalar_lea.hbm %s2515_s0, 512  ;;  %p1757_p0 = scmp.lt.u32.totalorder %s2216_s28, %s2515_s0 }
  0x73   : > { %p1754_p5 = pnand %p1753_p12, %p1752_p10  ;;  %p1758_p2 = scmp.lt.u32.totalorder %s1756_s30, %s1751_s12 }
  0x74   : > { %p1760_p9 = scmp.lt.u32.totalorder %s1751_s12, %s2216_s28 }
  0x75   : > { %p1755_p13 = pneg %p1754_p5  ;;  %p1759_p3 = por %p1758_p2, %p1757_p0 }
  0x77   : > { %p1761_p1 = por %p1760_p9, %p1759_p3 }
  0x79   : > { %p1762_p7 = pnand %p1761_p1, %p1755_p13 }
  0x7b   : > { %1765 = shalt.err (!%p1762_p7)
}
  0x7c   : > { %s1766_s11 = scalar_lea.vmem %s2218_s7, 128  ;;  %s1951_s9 = smov [#allocation4]  }
  0x7d   : > { %p1767_p10 = scmp.ne.s32.totalorder %s2218_s7, %s1766_s11  ;;  %s1771_s27 = sshll.u32 %s1951_s9, 4  ;;  %s1772_s27 = int_to_ptr.vmem [resolvable:$false] %s1771_s27 }
  0x7e   : > { %s1773_s21 = scalar_lea.vmem %s1772_s27, 256  ;;  %p1774_p11 = scmp.lt.s32.totalorder %s2218_s7, %s1772_s27 }
  0x7f   : > { %p1769_p5 = pnand %p1767_p10, %p1753_p12  ;;  %p1775_p0 = scmp.lt.s32.totalorder %s1773_s21, %s1766_s11 }
  0x81   : > { %p1770_p6 = pneg %p1769_p5  ;;  %p1776_p2 = por %p1775_p0, %p1774_p11 }
  0x83   : > { %p1777_p3 = pnand %p1776_p2, %p1770_p6 }
  0x85   : > { %1780 = shalt.err (!%p1777_p3)
}
  0x86   : > { %1554 = dma.hbm_to_vmem [thread:$0]  (!%p2222_p8), %s2216_s28, 128, %s2218_s7, %s355_s2  }
  0x87   : > { %s1381_s12 = sshll.u32 %s376_s29, 4  ;;  %s1432_s30 = sshll.u32 %s1941_s22, 8 }
  0x88   : > { %s2265_s11 = scalar_lea.hbm %s2516_s1, %s1432_s30  ;;  %s378_s6 = scalar_lea.vmem [#allocation7], %s1381_s12 }
  0x89   : > { %s385_s27 = sshll.u32 %s378_s6, 4  ;;  %s2271_s21 = scalar_lea.sflag [#allocation8], %s374_s8  ;;  %s2267_s27 = int_to_ptr.vmem [resolvable:$true] %s385_s27 }
  0x8a   : > { %s1781_s7 = scalar_lea.hbm %s2265_s11, 256  ;;  %p1783_p6 = pneg %p2228_p4 }
  0x8b   : > { %p1782_p11 = scmp.ne.s32.totalorder %s2265_s11, %s1781_s7  ;;  %s1786_s2 = scalar_lea.hbm %s2516_s1, 512 }
  0x8c   : > { %p1787_p12 = scmp.lt.u32.totalorder %s2265_s11, %s2516_s1  ;;  %p1788_p13 = scmp.lt.u32.totalorder %s1786_s2, %s1781_s7 }
  0x8d   : > { %p1784_p7 = pnand %p1783_p6, %p1782_p11  ;;  %p1790_p1 = scmp.lt.u32.totalorder %s1781_s7, %s2265_s11 }
  0x8e   : > { %p1789_p9 = por %p1788_p13, %p1787_p12 }
  0x8f   : > { %p1785_p8 = pneg %p1784_p7 }
  0x90   : > { %p1791_p10 = por %p1790_p1, %p1789_p9 }
  0x92   : > { %p1792_p5 = pnand %p1791_p10, %p1785_p8 }
  0x94   : > { %1795 = shalt.err (!%p1792_p5)
}
  0x95   : > { %s1796_s8 = scalar_lea.vmem %s2267_s27, 256  ;;  %s1952_s10 = smov [#allocation7]  }
  0x96   : > { %p1797_p0 = scmp.ne.s32.totalorder %s2267_s27, %s1796_s8  ;;  %s1801_s9 = sshll.u32 %s1952_s10, 4  ;;  %s1802_s9 = int_to_ptr.vmem [resolvable:$false] %s1801_s9 }
  0x97   : > { %s1803_s6 = scalar_lea.vmem %s1802_s9, 512  ;;  %p1804_p11 = scmp.lt.s32.totalorder %s2267_s27, %s1802_s9 }
  0x98   : > { %p1799_p2 = pnand %p1797_p0, %p1783_p6  ;;  %p1805_p7 = scmp.lt.s32.totalorder %s1803_s6, %s1796_s8 }
  0x9a   : > { %p1800_p3 = pneg %p1799_p2  ;;  %p1806_p12 = por %p1805_p7, %p1804_p11 }
  0x9c   : > { %p1807_p13 = pnand %p1806_p12, %p1800_p3 }
  0x9e   : > { %1810 = shalt.err (!%p1807_p13)
}
  0x9f   : > { %s1953_s7 = smov 128   ;;  %s1954_s28 = smov 8  }
  0xa0   : > { %1557 = dma.hbm_to_vmem [thread:$0]  (!%p2228_p4), %s2265_s11, 256, %s2267_s27, %s2271_s21, %s1953_s7, %s1953_s7, %s1954_s28  }
  0xa1   : > { %p2564_p6 = scmp.ne.s32.totalorder %s2548_s26, 0 }
  0xa2   : > { %s2302_s29 = sand.u32 (!%p2564_p6), 1, %s1921_s17   ;;  %p2565_p8 = scmp.ne.s32.totalorder (!%p2564_p6), %s2556_s20, 0 }
  0xa3   : > { %397 = sbr.rel (%p2564_p6) target bundleno = 2369 (0x941), region = 60  ;;  %s1385_s2 = sshll.u32 (!%p2564_p6), %s2302_s29, 3 }
  0xa4   : > { %s400_s30 = scalar_lea.sflag (!%p2564_p6), [#allocation5], %s2302_s29  ;;  %s2306_s12 = scalar_lea.vmem (!%p2564_p6), [#allocation4], %s1385_s2 }
  0xaa   : > { %1884 = dma.done.wait (%p2565_p8), %s400_s30, 128  }
  0xab   : > { %1886 = vsyncadd (%p2565_p8), %s400_s30, 4294967168  ;;  %s408_s26 = sand.u32 1, %s2070_s24   ;;  %s410_s4 = sand.u32 1, %s1909_s14  }
  0xac   : > { %s1386_s11 = sshll.u32 %s410_s4, 4  ;;  %s409_s27 = scalar_lea.sflag [#allocation8], %s408_s26 }
  0xad   : > { %s412_s21 = scalar_lea.vmem [#allocation7], %s1386_s11  ;;  %p2566_p4 = scmp.ne.s32.totalorder %s2547_s25, 0 }
  0xaf   : > { %1888 = dma.done.wait (%p2566_p4), %s409_s27, 256  }
  0xb0   : > { %1890 = vsyncadd (%p2566_p4), %s409_s27, 4294967040  ;;  %p2567_p9 = scmp.eq.s32.totalorder %s2070_s24, 0 }
  0xb2   : > { %1892 = dma.done.wait (%p2567_p9), [#allocation8], 256   ;;  %p2568_p1 = pmov %p2567_p9 }
  0xb4   : > { %1894 = vsyncadd (%p2568_p1), [#allocation8], 4294967040  ;;  %p2569_p10 = pmov %p2568_p1 }
  0xb5   : > { %p2570_p5 = pmov %p2568_p1 }
  0xb6   : > { %1896 = dma.done.wait (%p2569_p10), [#allocation11], 256  }
  0xb7   : > { %1898 = vsyncadd (%p2570_p5), [#allocation11], 4294967040  ;;  %s2326_s20 = scalar_lea.vmem [#allocation12], %s1385_s2  ;;  %p1390_p0 = scmp.ne.s32.totalorder %s1929_s19, 0 }
  0xb8   : > { %v467_v0 = vld [vmem:[%s412_s21] sm:$0xff] (!%p1390_p0)  ;;  %vm469_vm0 = vcmask (!%p1390_p0), 261120   ;;  %v468_v1 = vld [vmem:[%s412_s21 + $0x8] sm:$0xff] (!%p1390_p0)  ;;  %v1955_v15 = vmov (!%p1390_p0), 0.0   ;;  %vm1956_vm1 = vmmov (!%p1390_p0), 0   ;;  %s2571_s7 = sld [smem:[#allocation24_spill]] (!%p1390_p0) }
  0xb9   : > { %466 = sbr.rel (%p1390_p0) target bundleno = 836 (0x344), region = 80  ;;  %v470_v2 = vsel (!%p1390_p0), %vm469_vm0, %v467_v0, 0.0  ;;  %v473_v3 = vsel (!%p1390_p0), %vm469_vm0, %v468_v1, 0.0  ;;  %v1667_v14 = vld [vmem:[%s2520_s5] sm:$0xff] (!%p1390_p0)   ;;  %1458 = vmatprep.subr.bf16.mxu0 (!%p1390_p0), %v1955_v15  ;;  %v1668_v16 = vld [vmem:[%s2520_s5 + $0x8] sm:$0xff] (!%p1390_p0)   ;;  %1462 = vmatprep.mubr.msk.bf16.mxu0 (!%p1390_p0), %vm1956_vm1, %v1955_v15  ;;  %s2572_s30 = sld [smem:[#allocation25_spill]] (!%p1390_p0) }
  0xba   : > { %471 = vadd.xlane.f32.xlu0 (!%p1390_p0), %v470_v2  ;;  %1459 = vmatpush3.bf16.msra.mxu0 (!%p1390_p0), %v1667_v14  ;;  %s1957_s26 = smov (!%p1390_p0), 96  }
  0xbb   : > { %1460 = vmatprep.subr.bf16.mxu0 (!%p1390_p0), %v1955_v15 }
  0xbe   : > { %474 = vadd.xlane.f32.xlu0 (!%p1390_p0), %v473_v3  ;;  %1461 = vmatpush3.bf16.msra.mxu0 (!%p1390_p0), %v1668_v16  ;;  %v1391_v25 = vld [vmem:[%s2571_s7] ss:$0 sm:$0xff] (!%p1390_p0) }
  0xbf   : > { %v1392_v29 = vld [vmem:[%s2572_s30] ss:$0 sm:$0xff] (!%p1390_p0) }
 0x147   : > { %v472_v4 = vpop.xlane.xlu0 %471 }
 0x148   : > { %v477_v5 = vmul.f32 0.03125, %v472_v4 }
 0x14a   : > { %v479_v6 = vsub.f32 %v467_v0, %v477_v5 }
 0x14b   : > { %v475_v7 = vpop.xlane.xlu0 %474 }
 0x14c   : > { %v478_v8 = vmul.f32 0.03125, %v475_v7  ;;  %v481_v9 = vmul.f32 %v479_v6, %v479_v6 }
 0x14e   : > { %v480_v10 = vsub.f32 %v468_v1, %v478_v8  ;;  %v483_v11 = vsel %vm469_vm0, %v481_v9, 0.0 }
 0x14f   : > { %484 = vadd.xlane.f32.xlu1 %v483_v11 }
 0x150   : > { %v482_v12 = vmul.f32 %v480_v10, %v480_v10 }
 0x152   : > { %v486_v13 = vsel %vm469_vm0, %v482_v12, 0.0 }
 0x153   : > { %487 = vadd.xlane.f32.xlu1 %v486_v13 }
 0x1dc   : > { %v485_v17 = vpop.xlane.xlu1 %484 }
 0x1dd   : > { %v489_v18 = vmul.f32 0.03125, %v485_v17 }
 0x1df   : > { %v491_v19 = vadd.f32 1e-05, %v489_v18 }
 0x1e0   : > { %v488_v20 = vpop.xlane.xlu1 %487 }
 0x1e1   : > { %1669 = vrsqrt.f32 %v491_v19  ;;  %v490_v21 = vmul.f32 0.03125, %v488_v20 }
 0x1e3   : > { %v492_v22 = vadd.f32 1e-05, %v490_v21 }
 0x1e5   : > { %1671 = vrsqrt.f32 %v492_v22 }
 0x1eb   : > { %v1670_v23 = vpop.eup %1669 }
 0x1ec   : > { %v495_v24 = vmul.f32 %v1670_v23, %v479_v6 }
 0x1ee   : > { %v504_v28 = vmul.f32 %v1391_v25, %v495_v24 }
 0x1ef   : > { %v1672_v26 = vpop.eup %1671 }
 0x1f0   : > { %v496_v27 = vmul.f32 %v1672_v26, %v480_v10  ;;  %v513_v31 = vadd.f32 %v1392_v29, %v504_v28 }
 0x1f2   : > { %v505_v30 = vmul.f32 %v1391_v25, %v496_v27 }
 0x1f4   : > { %v514_v32 = vadd.f32 %v1392_v29, %v505_v30 }
 0x1f6   : > { %v515_v33 = vpack.c.bf16 %v514_v32, %v513_v31 }
 0x1f8   : > { %1463 = vmatmul.mubr.msk.bf16.vlgmr.msra.gmra.mrb[0].mxu0 %vm469_vm0, %v515_v33 }
 0x2cb   : > { %v569_v34 = vpop.f32.mrb[0].mxu0 }
 0x2cc   : > { %v1464_v35 = vpop.f32.mrb[1].mxu0 }
 0x2cd   : > { %v572_v36 = vpop.f32.mrb[2].mxu0 }
 0x2ce   : > { %v576_v37 = vpack.c.bf16 %v572_v36, %v569_v34  ;;  %v1465_v38 = vpop.f32.mrb[3].mxu0 }
 0x2d0   : > { %577 = vst.msk [vmem:[#allocation2] sm:$0xff] %vm469_vm0, %v576_v37  ;;  %579 = vrot.lane.b32.xlu0 %v576_v37, %s1957_s26 }
 0x342   : > { %v580_v39 = vpop.permute.xlu0 %579 }
 0x343   : > { %582 = vst.msk [vmem:[#allocation3] sm:$0xff] %vm469_vm0, %v580_v39 }
 0x344 PF: > { %v2349_v40 = vld [vmem:[%s2306_s12] sm:$0xff]  ;;  %vm584_vm2 = vcmask 261120   ;;  %v1673_v47 = vld [vmem:[#allocation9] sm:$0xff]   ;;  %v1958_v48 = vmov 0.0   ;;  %vm1959_vm3 = vmmov 0   ;;  %v1674_v49 = vld [vmem:[#allocation9 + $0x8] sm:$0xff]   ;;  %v677_v14 = vlaneseq }
 0x345   : > { %v585_v41 = vsel %vm584_vm2, %v2349_v40, 0.0  ;;  %1466 = vmatprep.subr.bf16.mxu0 %v1958_v48  ;;  %1470 = vmatprep.mubr.msk.bf16.mxu0 %vm1959_vm3, %v1958_v48  ;;  %v675_v50 = vld [vmem:[#allocation2] sm:$0xff]  ;;  %s2573_s11 = sld [smem:[#allocation24_spill]]  ;;  %s2574_s24 = sld [smem:[#allocation25_spill]]  ;;  %vm738_vm5 = vcmask 130048  }
 0x346   : > { %586 = vadd.xlane.f32.xlu0 %v585_v41  ;;  %1467 = vmatpush3.bf16.msra.mxu0 %v1673_v47  ;;  %v693_v51 = vsel %vm584_vm2, %v675_v50, 0  ;;  %s2575_s10 = sld [smem:[#allocation27_spill]]  ;;  %v678_v15 = vand.u32 127, %v677_v14  ;;  %s2576_s4 = sld [smem:[#allocation28_spill]] }
 0x347   : > { %1474 = vmatprep.subr.bf16.mxu1 %v1958_v48  ;;  %1468 = vmatprep.subr.bf16.mxu0 %v1958_v48  ;;  %s2577_s25 = sld [smem:[#allocation18_spill]]  ;;  %s2578_s30 = sld [smem:[#allocation30_spill]] }
 0x348   : > { %1476 = vmatprep.mubr.msk.bf16.mxu1 %vm1959_vm3, %v1958_v48  ;;  %1475 = vmatpush3.bf16.xpose.msra.mxu1 %v693_v51  ;;  %vm679_vm4 = vcmp.lt.s32.totalorder %v678_v15, 12  ;;  %v1675_v15 = vld [vmem:[#allocation10] sm:$0xff]   ;;  %s1245_s12 = sshll.u32 %s2326_s20, 4  ;;  %s2579_s21 = sld [smem:[#allocation31_spill]]  ;;  %s2452_s12 = int_to_ptr.vmem [resolvable:$true] %s1245_s12 }
 0x349   : > { %1486 = vmatprep.subr.bf16.mxu1 %v1958_v48  ;;  %p2581_p3 = scmp.ne.s32.totalorder %s2560_s3, 0  ;;  %s1960_s9 = smov [#allocation12]  }
 0x34a   : > { %1469 = vmatpush3.bf16.msra.mxu0 %v1674_v49 }
 0x34b   : > { %1480 = vmatprep.subr.bf16.mxu0 %v1958_v48  ;;  %v1396_v56 = vld [vmem:[%s2573_s11] ss:$0 sm:$0xff] }
 0x34c   : > { %v1397_v58 = vld [vmem:[%s2574_s24] ss:$0 sm:$0xff]  ;;  %v1406_v5 = vld [vmem:[%s2575_s10 + $0x1] ss:$0 sm:$0xff]  ;;  %v1412_v8 = vld [vmem:[%s2575_s10 + $0x2] ss:$0 sm:$0xff] }
 0x34d   : > { %v1401_v62 = vld [vmem:[%s2575_s10] ss:$0 sm:$0xff]  ;;  %v1418_v11 = vld [vmem:[%s2575_s10 + $0x3] ss:$0 sm:$0xff]  ;;  %s1428_s6 = sshll.u32 %s2577_s25, 1  ;;  %s1811_s25 = scalar_lea.vmem %s2452_s12, 128 }
 0x34e   : > { %s1241_s7 = sadd.s32 %s1929_s19, %s1428_s6  ;;  %s2580_s24 = smov %s2579_s21 }
 0x34f   : > { %s1429_s26 = sshll.u32 %s1241_s7, 7  ;;  %s1230_s19 = scalar_lea.sflag [#allocation6], %s2302_s29 }
 0x350   : > { %s2450_s8 = scalar_lea.hbm %s2579_s21, %s1429_s26  ;;  %p1812_p2 = scmp.ne.s32.totalorder %s2452_s12, %s1811_s25 }
 0x351   : > { %s1815_s6 = sshll.u32 %s1960_s9, 4  ;;  %s1816_s6 = int_to_ptr.vmem [resolvable:$false] %s1815_s6 }
 0x352   : > { %p1813_p11 = pnand %p1812_p2, %p2581_p3  ;;  %s1817_s7 = scalar_lea.vmem %s1816_s6, 256 }
 0x353   : > { %p1818_p12 = scmp.lt.s32.totalorder %s2452_s12, %s1816_s6  ;;  %p1819_p13 = scmp.lt.s32.totalorder %s1817_s7, %s1811_s25 }
 0x354   : > { %p1814_p7 = pneg %p1813_p11 }
 0x355   : > { %p1820_p6 = por %p1819_p13, %p1818_p12 }
 0x357   : > { %p1821_p8 = pnand %p1820_p6, %p1814_p7 }
 0x3d3   : > { %v587_v42 = vpop.xlane.xlu0 %586 }
 0x3d4   : > { %v589_v43 = vmul.f32 0.03125, %v587_v42 }
 0x3d6   : > { %v590_v44 = vsub.f32 %v2349_v40, %v589_v43 }
 0x3d8   : > { %v591_v45 = vmul.f32 %v590_v44, %v590_v44 }
 0x3da   : > { %v592_v46 = vsel %vm584_vm2, %v591_v45, 0.0 }
 0x3db   : > { %593 = vadd.xlane.f32.xlu0 %v592_v46 }
 0x468   : > { %v594_v52 = vpop.xlane.xlu0 %593 }
 0x469   : > { %v595_v53 = vmul.f32 0.03125, %v594_v52 }
 0x46b   : > { %v596_v54 = vadd.f32 1e-05, %v595_v53 }
 0x46d   : > { %1677 = vrsqrt.f32 %v596_v54 }
 0x477   : > { %v1678_v55 = vpop.eup %1677 }
 0x478   : > { %v598_v57 = vmul.f32 %v1678_v55, %v590_v44 }
 0x47a   : > { %v606_v59 = vmul.f32 %v1396_v56, %v598_v57 }
 0x47c   : > { %v614_v60 = vadd.f32 %v1397_v58, %v606_v59 }
 0x47e   : > { %v615_v61 = vpack.c.bf16 %v614_v60, %v614_v60 }
 0x480   : > { %1471 = vmatmul.mubr.msk.bf16.vlgmr.msra.gmra.mrb[0].mxu0 %vm584_vm2, %v615_v61 }
 0x481   : > { %1482 = vmatprep.mubr.msk.bf16.mxu0 %vm1959_vm3, %v1958_v48 }
 0x553   : > { %v669_v63 = vpop.f32.mrb[0].mxu0 }
 0x554   : > { %v687_v0 = vmul.f32 %v1401_v62, %v669_v63  ;;  %v1472_v1 = vpop.f32.mrb[1].mxu0  ;;  %v811_v6 = vmul.f32 %v1406_v5, %v669_v63  ;;  %v930_v9 = vmul.f32 %v1412_v8, %v669_v63  ;;  %v1049_v12 = vmul.f32 %v1418_v11, %v669_v63  ;;  %v676_v62 = vld [vmem:[#allocation3] sm:$0xff] }
 0x555   : > { %v672_v2 = vpop.f32.mrb[2].mxu0  ;;  %1481 = vmatpush3.bf16.msra.mxu0 %v676_v62 }
 0x556   : > { %v688_v3 = vpack.c.bf16 %v687_v0, %v687_v0  ;;  %v1473_v4 = vpop.f32.mrb[3].mxu0  ;;  %v812_v7 = vpack.c.bf16 %v811_v6, %v811_v6  ;;  %v931_v10 = vpack.c.bf16 %v930_v9, %v930_v9  ;;  %v1050_v13 = vpack.c.bf16 %v1049_v12, %v1049_v12  ;;  %1492 = vmatprep.subr.bf16.mxu0 %v1958_v48 }
 0x558   : > { %1477 = vmatmul.mubr.msk.bf16.vlgmr.msra.gmra.mrb[0].mxu1 %vm584_vm2, %v688_v3 }
 0x559   : > { %1487 = vmatpush3.bf16.xpose.msra.mxu1 %v693_v51  ;;  %1488 = vmatprep.mubr.msk.bf16.mxu1 %vm1959_vm3, %v1958_v48 }
 0x55a   : > { %1498 = vmatprep.subr.bf16.mxu1 %v1958_v48 }
 0x560   : > { %1489 = vmatmul.mubr.msk.bf16.vlgmr.msra.gmra.mrb[4].mxu1 %vm584_vm2, %v812_v7 }
 0x561   : > { %1499 = vmatpush3.bf16.xpose.msra.mxu1 %v693_v51  ;;  %1500 = vmatprep.mubr.msk.bf16.mxu1 %vm1959_vm3, %v1958_v48 }
 0x562   : > { %1510 = vmatprep.subr.bf16.mxu1 %v1958_v48 }
 0x568   : > { %1501 = vmatmul.mubr.msk.bf16.vlgmr.msra.gmra.mrb[8].mxu1 %vm584_vm2, %v931_v10 }
 0x569   : > { %1511 = vmatpush3.bf16.xpose.msra.mxu1 %v693_v51  ;;  %1512 = vmatprep.mubr.msk.bf16.mxu1 %vm1959_vm3, %v1958_v48 }
 0x56a   : > { %1522 = vmatprep.subr.bf16.mxu1 %v1958_v48 }
 0x570   : > { %1513 = vmatmul.mubr.msk.bf16.vlgmr.msra.gmra.mrb[12].mxu1 %vm584_vm2, %v1050_v13 }
 0x571   : > { %1526 = vmatprep.mubr.msk.bf16.mxu1 %vm1959_vm3, %v1958_v48  ;;  %1523 = vmatpush3.bf16.msra.mxu1 %v1675_v15 }
 0x572   : > { %1524 = vmatprep.subr.bf16.mxu1 %v1958_v48 }
 0x62b   : > { %v729_v16 = vpop.f32.mrb[0].mxu1 }
 0x62c   : > { %v737_v17 = vsel %vm679_vm4, %v729_v16, -1e+30  ;;  %v1478_v18 = vpop.f32.mrb[1].mxu1  ;;  %v1676_v16 = vld [vmem:[#allocation10 + $0x8] sm:$0xff]  }
 0x62d   : > { %v732_v19 = vpop.f32.mrb[2].mxu1  ;;  %v739_v20 = vsel %vm738_vm5, %v737_v17, -inf  ;;  %1525 = vmatpush3.bf16.msra.mxu1 %v1676_v16 }
 0x62e   : > { %740 = vmax.xlane.f32.xlu1 %v739_v20  ;;  %v1479_v21 = vpop.f32.mrb[3].mxu1 }
 0x62f   : > { %v1404_v21 = vld [vmem:[%s2576_s4] ss:$0 sm:$0xff] }
 0x633   : > { %v850_v22 = vpop.f32.mrb[4].mxu1 }
 0x634   : > { %v856_v23 = vsel %vm679_vm4, %v850_v22, -1e+30  ;;  %v1490_v24 = vpop.f32.mrb[5].mxu1  ;;  %v1410_v22 = vld [vmem:[%s2576_s4 + $0x1] ss:$0 sm:$0xff] }
 0x635   : > { %v853_v25 = vpop.f32.mrb[6].mxu1  ;;  %v857_v26 = vsel %vm738_vm5, %v856_v23, -inf }
 0x636   : > { %858 = vmax.xlane.f32.xlu1 %v857_v26  ;;  %v1491_v27 = vpop.f32.mrb[7].mxu1 }
 0x63b   : > { %v969_v28 = vpop.f32.mrb[8].mxu1 }
 0x63c   : > { %v975_v29 = vsel %vm679_vm4, %v969_v28, -1e+30  ;;  %v1502_v30 = vpop.f32.mrb[9].mxu1 }
 0x63d   : > { %v972_v31 = vpop.f32.mrb[10].mxu1  ;;  %v976_v32 = vsel %vm738_vm5, %v975_v29, -inf }
 0x63e   : > { %977 = vmax.xlane.f32.xlu0 %v976_v32  ;;  %v1503_v33 = vpop.f32.mrb[11].mxu1 }
 0x643   : > { %v1088_v34 = vpop.f32.mrb[12].mxu1 }
 0x644   : > { %v1094_v35 = vsel %vm679_vm4, %v1088_v34, -1e+30  ;;  %v1514_v36 = vpop.f32.mrb[13].mxu1 }
 0x645   : > { %v1091_v37 = vpop.f32.mrb[14].mxu1  ;;  %v1095_v38 = vsel %vm738_vm5, %v1094_v35, -inf  ;;  %v1422_v36 = vld [vmem:[%s2576_s4 + $0x3] ss:$0 sm:$0xff] }
 0x646   : > { %1096 = vmax.xlane.f32.xlu1 %v1095_v38  ;;  %v1515_v39 = vpop.f32.mrb[15].mxu1 }
 0x6bb   : > { %v741_v41 = vpop.xlane.xlu1 %740 }
 0x6bc   : > { %v742_v42 = vsub.f32 %v737_v17, %v741_v41 }
 0x6be   : > { %v743_v43 = vmul.f32 1.442695, %v742_v42 }
 0x6c0   : > { %1679 = vpow2.f32 %v743_v43 }
 0x6c3   : > { %v859_v44 = vpop.xlane.xlu1 %858 }
 0x6c4   : > { %v860_v45 = vsub.f32 %v856_v23, %v859_v44 }
 0x6c6   : > { %v861_v46 = vmul.f32 1.442695, %v860_v45  ;;  %v1423_v45 = vld [vmem:[%s2578_s30] ss:$0 sm:$0xff] }
 0x6c8   : > { %1681 = vpow2.f32 %v861_v46 }
 0x6ca   : > { %v1680_v47 = vpop.eup %1679 }
 0x6cb   : > { %v978_v49 = vpop.xlane.xlu0 %977  ;;  %v745_v50 = vsel %vm738_vm5, %v1680_v47, 0.0 }
 0x6cc   : > { %v979_v51 = vsub.f32 %v975_v29, %v978_v49  ;;  %746 = vadd.xlane.f32.xlu0 %v745_v50  ;;  %v1416_v29 = vld [vmem:[%s2576_s4 + $0x2] ss:$0 sm:$0xff] }
 0x6ce   : > { %v980_v52 = vmul.f32 1.442695, %v979_v51 }
 0x6d0   : > { %1683 = vpow2.f32 %v980_v52 }
 0x6d2   : > { %v1682_v53 = vpop.eup %1681 }
 0x6d3   : > { %v1097_v54 = vpop.xlane.xlu1 %1096  ;;  %v863_v55 = vsel %vm738_vm5, %v1682_v53, 0.0 }
 0x6d4   : > { %v1098_v56 = vsub.f32 %v1094_v35, %v1097_v54  ;;  %864 = vadd.xlane.f32.xlu1 %v863_v55 }
 0x6d6   : > { %v1099_v57 = vmul.f32 1.442695, %v1098_v56 }
 0x6d8   : > { %1685 = vpow2.f32 %v1099_v57 }
 0x6da   : > { %v1684_v58 = vpop.eup %1683 }
 0x6db   : > { %v982_v59 = vsel %vm738_vm5, %v1684_v58, 0.0 }
 0x6dc   : > { %983 = vadd.xlane.f32.xlu0 %v982_v59 }
 0x6e2   : > { %v1686_v60 = vpop.eup %1685 }
 0x6e3   : > { %v1101_v61 = vsel %vm738_vm5, %v1686_v60, 0.0 }
 0x6e4   : > { %1102 = vadd.xlane.f32.xlu1 %v1101_v61 }
 0x759   : > { %v747_v63 = vpop.xlane.xlu0 %746 }
 0x75a   : > { %1687 = vrcp.f32 %v747_v63 }
 0x761   : > { %v865_v0 = vpop.xlane.xlu1 %864 }
 0x762   : > { %1689 = vrcp.f32 %v865_v0 }
 0x764   : > { %v1688_v1 = vpop.eup %1687 }
 0x765   : > { %v749_v2 = vmul.f32 %v1688_v1, %v1680_v47 }
 0x767   : > { %v750_v3 = vpack.c.bf16 %v749_v2, %v749_v2 }
 0x769   : > { %1483 = vmatmul.mubr.msk.bf16.vlgmr.msra.gmra.mrb[4].mxu0 %vm738_vm5, %v750_v3  ;;  %v984_v4 = vpop.xlane.xlu0 %983 }
 0x76a   : > { %1493 = vmatpush3.bf16.msra.mxu0 %v676_v62  ;;  %1691 = vrcp.f32 %v984_v4  ;;  %1494 = vmatprep.mubr.msk.bf16.mxu0 %vm1959_vm3, %v1958_v48 }
 0x76b   : > { %1504 = vmatprep.subr.bf16.mxu0 %v1958_v48 }
 0x76c   : > { %v1690_v5 = vpop.eup %1689 }
 0x76d   : > { %v867_v6 = vmul.f32 %v1690_v5, %v1682_v53 }
 0x76f   : > { %v868_v7 = vpack.c.bf16 %v867_v6, %v867_v6 }
 0x771   : > { %1495 = vmatmul.mubr.msk.bf16.vlgmr.msra.gmra.mrb[8].mxu0 %vm738_vm5, %v868_v7  ;;  %v1103_v8 = vpop.xlane.xlu1 %1102 }
 0x772   : > { %1505 = vmatpush3.bf16.msra.mxu0 %v676_v62  ;;  %1693 = vrcp.f32 %v1103_v8  ;;  %1506 = vmatprep.mubr.msk.bf16.mxu0 %vm1959_vm3, %v1958_v48 }
 0x773   : > { %1516 = vmatprep.subr.bf16.mxu0 %v1958_v48 }
 0x774   : > { %v1692_v9 = vpop.eup %1691 }
 0x775   : > { %v986_v10 = vmul.f32 %v1692_v9, %v1684_v58 }
 0x777   : > { %v987_v11 = vpack.c.bf16 %v986_v10, %v986_v10 }
 0x779   : > { %1507 = vmatmul.mubr.msk.bf16.vlgmr.msra.gmra.mrb[12].mxu0 %vm738_vm5, %v987_v11 }
 0x77a   : > { %1517 = vmatpush3.bf16.msra.mxu0 %v676_v62  ;;  %1518 = vmatprep.mubr.msk.bf16.mxu0 %vm1959_vm3, %v1958_v48 }
 0x77c   : > { %v1694_v12 = vpop.eup %1693 }
 0x77d   : > { %v1105_v13 = vmul.f32 %v1694_v12, %v1686_v60 }
 0x77f   : > { %v1106_v14 = vpack.c.bf16 %v1105_v13, %v1105_v13 }
 0x781   : > { %1519 = vmatmul.mubr.msk.bf16.vlgmr.msra.gmra.mrb[16].mxu0 %vm738_vm5, %v1106_v14 }
 0x83c   : > { %v788_v17 = vpop.f32.mrb[4].mxu0 }
 0x83d   : > { %v1484_v18 = vpop.f32.mrb[5].mxu0  ;;  %v801_v24 = vmul.f32 %v1404_v21, %v788_v17 }
 0x83e   : > { %v791_v19 = vpop.f32.mrb[6].mxu0 }
 0x83f   : > { %v1485_v20 = vpop.f32.mrb[7].mxu0 }
 0x844   : > { %v906_v23 = vpop.f32.mrb[8].mxu0 }
 0x845   : > { %v920_v25 = vmul.f32 %v1410_v22, %v906_v23  ;;  %v1496_v26 = vpop.f32.mrb[9].mxu0 }
 0x846   : > { %v909_v27 = vpop.f32.mrb[10].mxu0 }
 0x847   : > { %v921_v48 = vadd.f32 %v920_v25, %v801_v24  ;;  %v1497_v28 = vpop.f32.mrb[11].mxu0 }
 0x84c   : > { %v1025_v30 = vpop.f32.mrb[12].mxu0 }
 0x84d   : > { %v1039_v31 = vmul.f32 %v1416_v29, %v1025_v30  ;;  %v1508_v32 = vpop.f32.mrb[13].mxu0 }
 0x84e   : > { %v1028_v33 = vpop.f32.mrb[14].mxu0 }
 0x84f   : > { %v1040_v34 = vadd.f32 %v1039_v31, %v921_v48  ;;  %v1509_v35 = vpop.f32.mrb[15].mxu0 }
 0x854   : > { %v1144_v37 = vpop.f32.mrb[16].mxu0 }
 0x855   : > { %v1158_v38 = vmul.f32 %v1422_v36, %v1144_v37  ;;  %v1520_v39 = vpop.f32.mrb[17].mxu0 }
 0x856   : > { %v1147_v41 = vpop.f32.mrb[18].mxu0 }
 0x857   : > { %v1159_v42 = vadd.f32 %v1158_v38, %v1040_v34  ;;  %v1521_v43 = vpop.f32.mrb[19].mxu0 }
 0x859   : > { %v1160_v44 = vpack.c.bf16 %v1159_v42, %v1159_v42 }
 0x85b   : > { %1527 = vmatmul.mubr.msk.bf16.vlgmr.msra.gmra.mrb[16].mxu1 %vm584_vm2, %v1160_v44 }
 0x92e   : > { %v1221_v46 = vpop.f32.mrb[16].mxu1 }
 0x92f   : > { %v1222_v47 = vadd.f32 %v1423_v45, %v1221_v46  ;;  %v1528_v49 = vpop.f32.mrb[17].mxu1 }
 0x930   : > { %v1224_v50 = vpop.f32.mrb[18].mxu1 }
 0x931   : > { %v1227_v51 = vadd.f32 %v1222_v47, %v2349_v40  ;;  %v1529_v52 = vpop.f32.mrb[19].mxu1 }
 0x933   : > { %1228 = vst.msk [vmem:[%s2326_s20] sm:$0xff] %vm584_vm2, %v1227_v51 }
 0x934   : > { %1824 = shalt.err (!%p1821_p8)
}
 0x935   : > { %s1825_s29 = scalar_lea.hbm %s2450_s8, 128  ;;  %s1829_s2 = scalar_lea.hbm %s2580_s24, 512 }
 0x936   : > { %p1826_p4 = scmp.ne.s32.totalorder %s2450_s8, %s1825_s29  ;;  %p1830_p10 = scmp.lt.u32.totalorder %s2450_s8, %s2580_s24 }
 0x937   : > { %p1831_p5 = scmp.lt.u32.totalorder %s1829_s2, %s1825_s29  ;;  %p1833_p2 = scmp.lt.u32.totalorder %s1825_s29, %s2450_s8 }
 0x938   : > { %p1827_p9 = pnand %p1826_p4, %p2581_p3 }
 0x939   : > { %p1832_p0 = por %p1831_p5, %p1830_p10 }
 0x93a   : > { %p1828_p1 = pneg %p1827_p9 }
 0x93b   : > { %p1834_p11 = por %p1833_p2, %p1832_p0 }
 0x93d   : > { %p1835_p7 = pnand %p1834_p11, %p1828_p1 }
 0x93f   : > { %1838 = shalt.err (!%p1835_p7)
}
 0x940   : > { %1542 = dma.vmem_to_hbm [thread:$0]  (%p2581_p3), %s2452_s12, 128, %s2450_s8, %s1230_s19  }
 0x941 PF: > { %p1567_p12 = scmp.ge.s32.totalorder %s1945_s23, 2  ;;  %s1257_s11 = sand.u32 1, %s1917_s16  }
 0x942   : > { %p2582_p13 = scmp.ne.s32.totalorder %s2561_s13, 0  ;;  %s1258_s27 = scalar_lea.sflag [#allocation6], %s1257_s11 }
 0x944   : > { %p1559_p6 = pnand %p1567_p12, %p2582_p13 }
 0x946   : > { %1900 = dma.done.wait (!%p1559_p6), %s1258_s27, 128  }
 0x947   : > { %1902 = vsyncadd (!%p1559_p6), %s1258_s27, 4294967168  ;;  %s30_s23 = sadd.s32 1, %s1945_s23   ;;  %s2583_s3 = sld [smem:[#allocation22_spill]] }
 0x948   : > { %p27_p8 = scmp.ge.s32.totalorder %s30_s23, 6   ;;  %s2584_s12 = sld [smem:[#allocation23_spill]] }
 0x949   : > { %s2585_s19 = sld [smem:[#allocation19_spill]]  ;;  %s2586_s21 = sld [smem:[#allocation20_spill]] }
 0x94a   : > { %s2587_s8 = sld [smem:[#allocation21_spill]]  ;;  %s2588_s13 = smov %s1909_s14 }
 0x94b   : > { %s2589_s14 = smov %s1913_s15  ;;  %s2591_s16 = smov %s1921_s17 }
 0x94c   : > { %s2592_s17 = smov %s1925_s18  ;;  %s2594_s20 = smov %s1941_s22 }
 0x94d   : > { %s2590_s15 = smov %s2583_s3  ;;  %29 = sbr.rel (!%p27_p8) target bundleno = 21 (0x15), region = 136 }
 0x94e   : > { %s2593_s18 = smov %s2584_s12 }
 0x950   : > { %s2595_s22 = smov %s2587_s8 }
 0x954   :  { %1263 = vsyncpa [#allocation5], 1 }
 0x955   :  { %1265 = vsyncpa [#allocation5 + $0x1], 1 }
 0x956   :  { %1266 = vsyncpa [#allocation8], 1 }
 0x957   :  { %1268 = vsyncpa [#allocation8 + $0x1], 1 }
 0x958   :  { %1269 = vsyncpa [#allocation11], 1 }
 0x959   :  { %1270 = vsyncpa [#allocation6], 1 }
 0x95a   :  { %1272 = vsyncpa [#allocation6 + $0x1], 1 }

</bundles_post_ra>
